<compile_context>
chip_gen: v5e
topology: v5e:2x2
jax: 0.10.0
libtpu: 0.0.40
codegen_flags: <defaults>
</compile_context>

<pallas_src>
import functools

import jax
import jax.numpy as jnp
from jax.experimental import pallas as pl
from jax.experimental.pallas import tpu as pltpu


def _attn_spa2_kernel(x_ref, y_ref, wqT_ref, wkT_ref, wvT_ref, wpT_ref, bp_ref,
                      o_ref, kv_ref, *, scale, num_heads, head_dim):
    """One (batch, query-tile) grid step of cross-attention + fused proj.

    x_ref  : (1, NT, C)  query tokens for this (batch, query-tile)
    y_ref  : (1, M,  C)  all kv tokens for this batch (VMEM-resident over n)
    wqT_ref: (C, C)      q.weight.T
    wkT_ref: (C, C)      kv.weight[:C].T  (K projection)
    wvT_ref: (C, C)      kv.weight[C:].T  (V projection)
    wpT_ref: (C, C)      proj.weight.T
    bp_ref : (1, C)      proj bias
    o_ref  : (1, NT, C)  output block (written once per step)
    kv_ref : (2, M, C)   persistent VMEM scratch caching K / V for this batch
    """
    n = pl.program_id(1)

    # Project K and V once per batch.  Correct because the query-tile axis is
    # the innermost, sequential ('arbitrary') grid axis: n == 0 runs first for
    # every batch and kv_ref persists across the remaining query tiles.
    @pl.when(n == 0)
    def _():
        y = y_ref[0]                                                     # (M, C)
        kv_ref[0] = jnp.dot(y, wkT_ref[...],
                            preferred_element_type=jnp.float32)          # K (M, C)
        kv_ref[1] = jnp.dot(y, wvT_ref[...],
                            preferred_element_type=jnp.float32)          # V (M, C)

    # Full-width query projection: one (NT, C) x (C, C) MXU matmul.
    q = jnp.dot(x_ref[0], wqT_ref[...],
                preferred_element_type=jnp.float32) * scale              # (NT, C)
    k = kv_ref[0]                                                        # (M, C)
    v = kv_ref[1]                                                        # (M, C)

    # Per-head attention: S = q_h k_h^T, unnormalized P = exp(S - max);
    # normalize AFTER the P @ v_h matmul with an EUP reciprocal.
    cdims = (((1,), (1,)), ((), ()))                    # contract last dims
    o_heads = []
    for h in range(num_heads):
        lo = h * head_dim
        hi = lo + head_dim
        s = jax.lax.dot_general(q[:, lo:hi], k[:, lo:hi], cdims,
                                preferred_element_type=jnp.float32)      # (NT, M)
        s = s - jnp.max(s, axis=-1, keepdims=True)
        p = jnp.exp(s)
        denom = jnp.sum(p, axis=-1, keepdims=True)                       # (NT, 1)
        oh = jnp.dot(p, v[:, lo:hi],
                     preferred_element_type=jnp.float32)                 # (NT, d)
        o_heads.append(oh * pl.reciprocal(denom, approx=True))
    o = jnp.concatenate(o_heads, axis=-1)                                # (NT, C)

    # Fused output projection: single full-C (NT, C) x (C, C) MXU matmul.
    out = jnp.dot(o, wpT_ref[...],
                  preferred_element_type=jnp.float32) + bp_ref[...]      # (NT, C)
    o_ref[0] = out.astype(o_ref.dtype)


def _vmem_limit_bytes():
    """Generation-aware VMEM limit (~75% of physical, capped at 100 MiB)."""
    try:
        cap = int(pltpu.get_tpu_info().vmem_capacity_bytes)
    except Exception:
        cap = 64 * 1024 * 1024
    return min(int(cap * 0.75), 100 * 1024 * 1024)


def _pick_query_tile(n, m, c, vmem_budget):
    """Largest sublane-friendly query tile (nt % 8 == 0, nt | N) fitting VMEM."""
    # Resident regardless of nt: y block (x2 buffers), 4 weights + bias
    # (x2 buffers each), K/V scratch.
    fixed = 4 * (2 * m * c + 2 * (4 * c * c + c) + 2 * m * c)
    avail = max(vmem_budget // 2 - fixed, 2 * 1024 * 1024)
    for t in (1024, 512, 256, 128, 64, 32, 16, 8):
        if n % t != 0 or t % 8 != 0:
            continue
        # x + out blocks double-buffered plus the (nt, M) score working set.
        need = 4 * (4 * t * c + 2 * t * m)
        if need <= avail:
            return t
    return n   # awkward N: fall back to a single full-N tile


def attention_spa2_forward(x, y, params, num_heads, H=None, W=None):
    """x: (B, N, C) queries, y: (B, M, C) kv tokens -> (B, N, C).  sr_ratio == 1."""
    # TODO(synk): sr_ratio > 1 branch (strided Conv2d `sr` + LayerNorm on the kv
    # path) is not implemented; only the default sr_ratio=1 path is covered.
    B, N, C = x.shape
    _, M, _ = y.shape
    assert C % num_heads == 0
    d = C // num_heads
    scale = float(d) ** -0.5

    w_qT = params["w_q"].T            # (C, C)
    w_kT = params["w_kv"][:C].T       # (C, C)   K projection
    w_vT = params["w_kv"][C:].T       # (C, C)   V projection
    w_pT = params["w_proj"].T         # (C, C)
    b_p = params["b_proj"].reshape(1, C)

    vmem_limit = _vmem_limit_bytes()
    nt = _pick_query_tile(N, M, C, vmem_limit)
    grid = (B, N // nt)

    flops = 2 * B * (N * C * C            # Q projection
                     + 2 * M * C * C      # K/V projection (once per batch)
                     + 2 * N * M * C      # scores + PV (summed over heads)
                     + N * C * C)         # fused output projection
    bytes_accessed = 4 * (2 * B * N * C + B * M * C + 4 * C * C + C)

    # NOTE: the query-tile axis must stay 'arbitrary' -- the per-batch K/V
    # cache in VMEM scratch relies on n == 0 executing first and the remaining
    # tiles running sequentially on the same core.  The batch axis is
    # 'parallel' (megacore sharding on v7x).
    out = pl.pallas_call(
        functools.partial(_attn_spa2_kernel, scale=scale,
                          num_heads=num_heads, head_dim=d),
        out_shape=jax.ShapeDtypeStruct((B, N, C), jnp.float32),
        grid=grid,
        in_specs=[
            pl.BlockSpec((1, nt, C), lambda b, n: (b, n, 0)),   # x queries
            pl.BlockSpec((1, M, C), lambda b, n: (b, 0, 0)),    # y kv tokens (resident over n)
            pl.BlockSpec((C, C), lambda b, n: (0, 0)),          # q.weight.T
            pl.BlockSpec((C, C), lambda b, n: (0, 0)),          # kv.weight[:C].T (K)
            pl.BlockSpec((C, C), lambda b, n: (0, 0)),          # kv.weight[C:].T (V)
            pl.BlockSpec((C, C), lambda b, n: (0, 0)),          # proj.weight.T
            pl.BlockSpec((1, C), lambda b, n: (0, 0)),          # proj bias
        ],
        out_specs=pl.BlockSpec((1, nt, C), lambda b, n: (b, n, 0)),
        scratch_shapes=[pltpu.VMEM((2, M, C), jnp.float32)],     # per-batch K/V cache
        compiler_params=pltpu.CompilerParams(
            dimension_semantics=("parallel", "arbitrary"),
            vmem_limit_bytes=vmem_limit,
        ),
        cost_estimate=pl.CostEstimate(
            flops=flops,
            transcendentals=B * num_heads * N * M,
            bytes_accessed=bytes_accessed,
        ),
    )(x, y, w_qT, w_kT, w_vT, w_pT, b_p)
    return out


def _reference_forward(x, y, params, num_heads):
    """Pure-JAX reference of the PyTorch forward (sr_ratio=1, dropout p=0)."""
    B, N, C = x.shape
    M = y.shape[1]
    d = C // num_heads
    scale = float(d) ** -0.5
    q = (x @ params["w_q"].T).reshape(B, N, num_heads, d).transpose(0, 2, 1, 3)
    kv = y @ params["w_kv"].T
    k = kv[..., :C].reshape(B, M, num_heads, d).transpose(0, 2, 1, 3)
    v = kv[..., C:].reshape(B, M, num_heads, d).transpose(0, 2, 1, 3)
    attn = jnp.einsum("bhnd,bhmd->bhnm", q, k) * scale
    attn = jax.nn.softmax(attn, axis=-1)
    o = jnp.einsum("bhnm,bhmd->bhnd", attn, v)
    o = o.transpose(0, 2, 1, 3).reshape(B, N, C)
    return o @ params["w_proj"].T + params["b_proj"]


def init_params(key, dim):
    """Deterministic synthetic parameters matching nn.Linear shapes (qkv_bias=False)."""
    k1, k2, k3, k4 = jax.random.split(key, 4)
    bound = 1.0 / jnp.sqrt(dim)
    return {
        "w_q": jax.random.uniform(k1, (dim, dim), jnp.float32, -bound, bound),
        "w_kv": jax.random.uniform(k2, (2 * dim, dim), jnp.float32, -bound, bound),
        "w_proj": jax.random.uniform(k3, (dim, dim), jnp.float32, -bound, bound),
        "b_proj": jax.random.uniform(k4, (dim,), jnp.float32, -bound, bound),
    }


if __name__ == "__main__":
    key = jax.random.PRNGKey(0)
    kx, ky, kp = jax.random.split(key, 3)

    B, C, HEADS = 2, 32, 4
    Himg, Wimg = 16, 8
    N = Himg * Wimg          # 128 query tokens
    M = 64                   # cross-attention: 64 kv tokens

    x = jax.random.normal(kx, (B, N, C), dtype=jnp.float32)
    y = jax.random.normal(ky, (B, M, C), dtype=jnp.float32)
    params = init_params(kp, C)

    out = attention_spa2_forward(x, y, params, HEADS, Himg, Wimg)
    out = jax.block_until_ready(out)

    # silent correctness check against pure-JAX reference (tolerance accounts
    # for the EUP approximate reciprocal used for the softmax denominator)
    ref = jax.block_until_ready(_reference_forward(x, y, params, HEADS))
    assert out.shape == (B, N, C)
    assert jnp.allclose(out, ref, atol=2e-3, rtol=2e-3), float(jnp.max(jnp.abs(out - ref)))

    print("KERNEL_OK")
</pallas_src>

<mosaic_0001>
module attributes {stable_mosaic.version = 11 : i64} {
  func.func @_attn_spa2_kernel(%arg0: i32, %arg1: i32, %arg2: memref<1x128x32xf32, #tpu.memory_space<vmem>>, %arg3: memref<1x64x32xf32, #tpu.memory_space<vmem>>, %arg4: memref<32x32xf32, #tpu.memory_space<vmem>>, %arg5: memref<32x32xf32, #tpu.memory_space<vmem>>, %arg6: memref<32x32xf32, #tpu.memory_space<vmem>>, %arg7: memref<32x32xf32, #tpu.memory_space<vmem>>, %arg8: memref<1x32xf32, #tpu.memory_space<vmem>>, %arg9: memref<1x128x32xf32, #tpu.memory_space<vmem>>, %arg10: memref<2x64x32xf32, #tpu.memory_space<vmem>>) attributes {dimension_semantics = [#tpu.dimension_semantics<parallel>, #tpu.dimension_semantics<arbitrary>], iteration_bounds = array<i64: 2, 1>, scalar_prefetch = 0 : i64, scratch_operands = 1 : i64, tpu.core_type = #tpu.core_type<tc>, window_params = [{transform_indices = @transform_0, window_bounds = array<i64: 1, 128, 32>}, {transform_indices = @transform_1, window_bounds = array<i64: 1, 64, 32>}, {pipeline_mode = #tpu.pipeline_mode<synchronous>, transform_indices = @transform_2, window_bounds = array<i64: 32, 32>}, {pipeline_mode = #tpu.pipeline_mode<synchronous>, transform_indices = @transform_3, window_bounds = array<i64: 32, 32>}, {pipeline_mode = #tpu.pipeline_mode<synchronous>, transform_indices = @transform_4, window_bounds = array<i64: 32, 32>}, {pipeline_mode = #tpu.pipeline_mode<synchronous>, transform_indices = @transform_5, window_bounds = array<i64: 32, 32>}, {pipeline_mode = #tpu.pipeline_mode<synchronous>, transform_indices = @transform_6, window_bounds = array<i64: 1, 32>}, {transform_indices = @transform_7, window_bounds = array<i64: 1, 128, 32>}]} {
    %c0_i32 = arith.constant 0 : i32
    %0 = arith.cmpi eq, %arg1, %c0_i32 : i32
    %1 = arith.extui %0 : i1 to i32
    %c0_i32_0 = arith.constant 0 : i32
    %2 = arith.cmpi ne, %1, %c0_i32_0 : i32
    scf.if %2 {
      %c0_35 = arith.constant 0 : index
      %c0_36 = arith.constant 0 : index
      %c0_37 = arith.constant 0 : index
      %82 = vector.load %arg3[%c0_35, %c0_36, %c0_37] : memref<1x64x32xf32, #tpu.memory_space<vmem>>, vector<1x64x32xf32>
      %83 = vector.shape_cast %82 : vector<1x64x32xf32> to vector<64x32xf32>
      %c0_38 = arith.constant 0 : index
      %c0_39 = arith.constant 0 : index
      %84 = vector.load %arg5[%c0_38, %c0_39] : memref<32x32xf32, #tpu.memory_space<vmem>>, vector<32x32xf32>
      %cst_40 = arith.constant dense<0.000000e+00> : vector<64x32xf32>
      %85 = tpu.matmul %83, %84, %cst_40 {dimension_numbers = #tpu.dot_dimension_numbers<[1], [0], [0], [1], [0, 0, 1, 1], [], []>} : vector<64x32xf32>, vector<32x32xf32>, vector<64x32xf32> -> vector<64x32xf32>
      %c0_41 = arith.constant 0 : index
      %c0_42 = arith.constant 0 : index
      %c0_43 = arith.constant 0 : index
      %86 = vector.load %arg10[%c0_41, %c0_42, %c0_43] : memref<2x64x32xf32, #tpu.memory_space<vmem>>, vector<1x64x32xf32>
      %87 = vector.shape_cast %86 : vector<1x64x32xf32> to vector<64x32xf32>
      %88 = vector.shape_cast %85 : vector<64x32xf32> to vector<1x64x32xf32>
      tpu.vector_store %arg10[%c0_41, %c0_42, %c0_43], %88 {strides = array<i32>} : memref<2x64x32xf32, #tpu.memory_space<vmem>>, vector<1x64x32xf32>,
      %c0_44 = arith.constant 0 : index
      %c0_45 = arith.constant 0 : index
      %89 = vector.load %arg6[%c0_44, %c0_45] : memref<32x32xf32, #tpu.memory_space<vmem>>, vector<32x32xf32>
      %cst_46 = arith.constant dense<0.000000e+00> : vector<64x32xf32>
      %90 = tpu.matmul %83, %89, %cst_46 {dimension_numbers = #tpu.dot_dimension_numbers<[1], [0], [0], [1], [0, 0, 1, 1], [], []>} : vector<64x32xf32>, vector<32x32xf32>, vector<64x32xf32> -> vector<64x32xf32>
      %c1_47 = arith.constant 1 : index
      %c0_48 = arith.constant 0 : index
      %c0_49 = arith.constant 0 : index
      %91 = vector.load %arg10[%c1_47, %c0_48, %c0_49] : memref<2x64x32xf32, #tpu.memory_space<vmem>>, vector<1x64x32xf32>
      %92 = vector.shape_cast %91 : vector<1x64x32xf32> to vector<64x32xf32>
      %93 = vector.shape_cast %90 : vector<64x32xf32> to vector<1x64x32xf32>
      tpu.vector_store %arg10[%c1_47, %c0_48, %c0_49], %93 {strides = array<i32>} : memref<2x64x32xf32, #tpu.memory_space<vmem>>, vector<1x64x32xf32>,
    } else {
    }
    %c0 = arith.constant 0 : index
    %c0_1 = arith.constant 0 : index
    %c0_2 = arith.constant 0 : index
    %3 = vector.load %arg2[%c0, %c0_1, %c0_2] : memref<1x128x32xf32, #tpu.memory_space<vmem>>, vector<1x128x32xf32>
    %4 = vector.shape_cast %3 : vector<1x128x32xf32> to vector<128x32xf32>
    %c0_3 = arith.constant 0 : index
    %c0_4 = arith.constant 0 : index
    %5 = vector.load %arg4[%c0_3, %c0_4] : memref<32x32xf32, #tpu.memory_space<vmem>>, vector<32x32xf32>
    %cst = arith.constant dense<0.000000e+00> : vector<128x32xf32>
    %6 = tpu.matmul %4, %5, %cst {dimension_numbers = #tpu.dot_dimension_numbers<[1], [0], [0], [1], [0, 0, 1, 1], [], []>} : vector<128x32xf32>, vector<32x32xf32>, vector<128x32xf32> -> vector<128x32xf32>
    %cst_5 = arith.constant 0.353553385 : f32
    %7 = vector.broadcast %cst_5 : f32 to vector<128x32xf32>
    %8 = arith.mulf %6, %7 : vector<128x32xf32>
    %c0_6 = arith.constant 0 : index
    %c0_7 = arith.constant 0 : index
    %c0_8 = arith.constant 0 : index
    %9 = vector.load %arg10[%c0_6, %c0_7, %c0_8] : memref<2x64x32xf32, #tpu.memory_space<vmem>>, vector<1x64x32xf32>
    %10 = vector.shape_cast %9 : vector<1x64x32xf32> to vector<64x32xf32>
    %c1 = arith.constant 1 : index
    %c0_9 = arith.constant 0 : index
    %c0_10 = arith.constant 0 : index
    %11 = vector.load %arg10[%c1, %c0_9, %c0_10] : memref<2x64x32xf32, #tpu.memory_space<vmem>>, vector<1x64x32xf32>
    %12 = vector.shape_cast %11 : vector<1x64x32xf32> to vector<64x32xf32>
    %13 = vector.extract_strided_slice %8 {offsets = [0, 0], sizes = [128, 8], strides = [1, 1]} : vector<128x32xf32> to vector<128x8xf32>
    %14 = vector.extract_strided_slice %10 {offsets = [0, 0], sizes = [64, 8], strides = [1, 1]} : vector<64x32xf32> to vector<64x8xf32>
    %cst_11 = arith.constant dense<0.000000e+00> : vector<128x64xf32>
    %15 = tpu.matmul %13, %14, %cst_11 {dimension_numbers = #tpu.dot_dimension_numbers<[1], [1], [0], [0], [0, 0, 1, 0], [], []>} : vector<128x8xf32>, vector<64x8xf32>, vector<128x64xf32> -> vector<128x64xf32>
    %cst_12 = arith.constant dense<0xFF800000> : vector<128xf32>
    %16 = vector.multi_reduction <maximumf>, %15, %cst_12 [1] : vector<128x64xf32> to vector<128xf32>
    %17 = vector.shape_cast %16 : vector<128xf32> to vector<128x1xf32>
    %18 = vector.broadcast %17 : vector<128x1xf32> to vector<128x64xf32>
    %19 = arith.subf %15, %18 : vector<128x64xf32>
    %20 = math.exp %19 : vector<128x64xf32>
    %cst_13 = arith.constant dense<0.000000e+00> : vector<128xf32>
    %21 = vector.multi_reduction <add>, %20, %cst_13 [1] : vector<128x64xf32> to vector<128xf32>
    %22 = vector.shape_cast %21 : vector<128xf32> to vector<128x1xf32>
    %23 = vector.extract_strided_slice %12 {offsets = [0, 0], sizes = [64, 8], strides = [1, 1]} : vector<64x32xf32> to vector<64x8xf32>
    %cst_14 = arith.constant dense<0.000000e+00> : vector<128x8xf32>
    %24 = tpu.matmul %20, %23, %cst_14 {dimension_numbers = #tpu.dot_dimension_numbers<[1], [0], [0], [1], [0, 0, 1, 1], [], []>} : vector<128x64xf32>, vector<64x8xf32>, vector<128x8xf32> -> vector<128x8xf32>
    %25 = tpu.reciprocal %22 {approx = true} : vector<128x1xf32> -> vector<128x1xf32>
    %26 = vector.broadcast %25 : vector<128x1xf32> to vector<128x8xf32>
    %27 = arith.mulf %24, %26 : vector<128x8xf32>
    %28 = vector.extract_strided_slice %8 {offsets = [0, 8], sizes = [128, 8], strides = [1, 1]} : vector<128x32xf32> to vector<128x8xf32>
    %29 = vector.extract_strided_slice %10 {offsets = [0, 8], sizes = [64, 8], strides = [1, 1]} : vector<64x32xf32> to vector<64x8xf32>
    %cst_15 = arith.constant dense<0.000000e+00> : vector<128x64xf32>
    %30 = tpu.matmul %28, %29, %cst_15 {dimension_numbers = #tpu.dot_dimension_numbers<[1], [1], [0], [0], [0, 0, 1, 0], [], []>} : vector<128x8xf32>, vector<64x8xf32>, vector<128x64xf32> -> vector<128x64xf32>
    %cst_16 = arith.constant dense<0xFF800000> : vector<128xf32>
    %31 = vector.multi_reduction <maximumf>, %30, %cst_16 [1] : vector<128x64xf32> to vector<128xf32>
    %32 = vector.shape_cast %31 : vector<128xf32> to vector<128x1xf32>
    %33 = vector.broadcast %32 : vector<128x1xf32> to vector<128x64xf32>
    %34 = arith.subf %30, %33 : vector<128x64xf32>
    %35 = math.exp %34 : vector<128x64xf32>
    %cst_17 = arith.constant dense<0.000000e+00> : vector<128xf32>
    %36 = vector.multi_reduction <add>, %35, %cst_17 [1] : vector<128x64xf32> to vector<128xf32>
    %37 = vector.shape_cast %36 : vector<128xf32> to vector<128x1xf32>
    %38 = vector.extract_strided_slice %12 {offsets = [0, 8], sizes = [64, 8], strides = [1, 1]} : vector<64x32xf32> to vector<64x8xf32>
    %cst_18 = arith.constant dense<0.000000e+00> : vector<128x8xf32>
    %39 = tpu.matmul %35, %38, %cst_18 {dimension_numbers = #tpu.dot_dimension_numbers<[1], [0], [0], [1], [0, 0, 1, 1], [], []>} : vector<128x64xf32>, vector<64x8xf32>, vector<128x8xf32> -> vector<128x8xf32>
    %40 = tpu.reciprocal %37 {approx = true} : vector<128x1xf32> -> vector<128x1xf32>
    %41 = vector.broadcast %40 : vector<128x1xf32> to vector<128x8xf32>
    %42 = arith.mulf %39, %41 : vector<128x8xf32>
    %43 = vector.extract_strided_slice %8 {offsets = [0, 16], sizes = [128, 8], strides = [1, 1]} : vector<128x32xf32> to vector<128x8xf32>
    %44 = vector.extract_strided_slice %10 {offsets = [0, 16], sizes = [64, 8], strides = [1, 1]} : vector<64x32xf32> to vector<64x8xf32>
    %cst_19 = arith.constant dense<0.000000e+00> : vector<128x64xf32>
    %45 = tpu.matmul %43, %44, %cst_19 {dimension_numbers = #tpu.dot_dimension_numbers<[1], [1], [0], [0], [0, 0, 1, 0], [], []>} : vector<128x8xf32>, vector<64x8xf32>, vector<128x64xf32> -> vector<128x64xf32>
    %cst_20 = arith.constant dense<0xFF800000> : vector<128xf32>
    %46 = vector.multi_reduction <maximumf>, %45, %cst_20 [1] : vector<128x64xf32> to vector<128xf32>
    %47 = vector.shape_cast %46 : vector<128xf32> to vector<128x1xf32>
    %48 = vector.broadcast %47 : vector<128x1xf32> to vector<128x64xf32>
    %49 = arith.subf %45, %48 : vector<128x64xf32>
    %50 = math.exp %49 : vector<128x64xf32>
    %cst_21 = arith.constant dense<0.000000e+00> : vector<128xf32>
    %51 = vector.multi_reduction <add>, %50, %cst_21 [1] : vector<128x64xf32> to vector<128xf32>
    %52 = vector.shape_cast %51 : vector<128xf32> to vector<128x1xf32>
    %53 = vector.extract_strided_slice %12 {offsets = [0, 16], sizes = [64, 8], strides = [1, 1]} : vector<64x32xf32> to vector<64x8xf32>
    %cst_22 = arith.constant dense<0.000000e+00> : vector<128x8xf32>
    %54 = tpu.matmul %50, %53, %cst_22 {dimension_numbers = #tpu.dot_dimension_numbers<[1], [0], [0], [1], [0, 0, 1, 1], [], []>} : vector<128x64xf32>, vector<64x8xf32>, vector<128x8xf32> -> vector<128x8xf32>
    %55 = tpu.reciprocal %52 {approx = true} : vector<128x1xf32> -> vector<128x1xf32>
    %56 = vector.broadcast %55 : vector<128x1xf32> to vector<128x8xf32>
    %57 = arith.mulf %54, %56 : vector<128x8xf32>
    %58 = vector.extract_strided_slice %8 {offsets = [0, 24], sizes = [128, 8], strides = [1, 1]} : vector<128x32xf32> to vector<128x8xf32>
    %59 = vector.extract_strided_slice %10 {offsets = [0, 24], sizes = [64, 8], strides = [1, 1]} : vector<64x32xf32> to vector<64x8xf32>
    %cst_23 = arith.constant dense<0.000000e+00> : vector<128x64xf32>
    %60 = tpu.matmul %58, %59, %cst_23 {dimension_numbers = #tpu.dot_dimension_numbers<[1], [1], [0], [0], [0, 0, 1, 0], [], []>} : vector<128x8xf32>, vector<64x8xf32>, vector<128x64xf32> -> vector<128x64xf32>
    %cst_24 = arith.constant dense<0xFF800000> : vector<128xf32>
    %61 = vector.multi_reduction <maximumf>, %60, %cst_24 [1] : vector<128x64xf32> to vector<128xf32>
    %62 = vector.shape_cast %61 : vector<128xf32> to vector<128x1xf32>
    %63 = vector.broadcast %62 : vector<128x1xf32> to vector<128x64xf32>
    %64 = arith.subf %60, %63 : vector<128x64xf32>
    %65 = math.exp %64 : vector<128x64xf32>
    %cst_25 = arith.constant dense<0.000000e+00> : vector<128xf32>
    %66 = vector.multi_reduction <add>, %65, %cst_25 [1] : vector<128x64xf32> to vector<128xf32>
    %67 = vector.shape_cast %66 : vector<128xf32> to vector<128x1xf32>
    %68 = vector.extract_strided_slice %12 {offsets = [0, 24], sizes = [64, 8], strides = [1, 1]} : vector<64x32xf32> to vector<64x8xf32>
    %cst_26 = arith.constant dense<0.000000e+00> : vector<128x8xf32>
    %69 = tpu.matmul %65, %68, %cst_26 {dimension_numbers = #tpu.dot_dimension_numbers<[1], [0], [0], [1], [0, 0, 1, 1], [], []>} : vector<128x64xf32>, vector<64x8xf32>, vector<128x8xf32> -> vector<128x8xf32>
    %70 = tpu.reciprocal %67 {approx = true} : vector<128x1xf32> -> vector<128x1xf32>
    %71 = vector.broadcast %70 : vector<128x1xf32> to vector<128x8xf32>
    %72 = arith.mulf %69, %71 : vector<128x8xf32>
    %73 = tpu.concatenate %27, %42, %57, %72 in 1 : vector<128x8xf32>, vector<128x8xf32>, vector<128x8xf32>, vector<128x8xf32> -> vector<128x32xf32>
    %c0_27 = arith.constant 0 : index
    %c0_28 = arith.constant 0 : index
    %74 = vector.load %arg7[%c0_27, %c0_28] : memref<32x32xf32, #tpu.memory_space<vmem>>, vector<32x32xf32>
    %cst_29 = arith.constant dense<0.000000e+00> : vector<128x32xf32>
    %75 = tpu.matmul %73, %74, %cst_29 {dimension_numbers = #tpu.dot_dimension_numbers<[1], [0], [0], [1], [0, 0, 1, 1], [], []>} : vector<128x32xf32>, vector<32x32xf32>, vector<128x32xf32> -> vector<128x32xf32>
    %c0_30 = arith.constant 0 : index
    %c0_31 = arith.constant 0 : index
    %76 = vector.load %arg8[%c0_30, %c0_31] : memref<1x32xf32, #tpu.memory_space<vmem>>, vector<1x32xf32>
    %77 = vector.broadcast %76 : vector<1x32xf32> to vector<128x32xf32>
    %78 = arith.addf %75, %77 : vector<128x32xf32>
    %c0_32 = arith.constant 0 : index
    %c0_33 = arith.constant 0 : index
    %c0_34 = arith.constant 0 : index
    %79 = vector.load %arg9[%c0_32, %c0_33, %c0_34] : memref<1x128x32xf32, #tpu.memory_space<vmem>>, vector<1x128x32xf32>
    %80 = vector.shape_cast %79 : vector<1x128x32xf32> to vector<128x32xf32>
    %81 = vector.shape_cast %78 : vector<128x32xf32> to vector<1x128x32xf32>
    tpu.vector_store %arg9[%c0_32, %c0_33, %c0_34], %81 {strides = array<i32>} : memref<1x128x32xf32, #tpu.memory_space<vmem>>, vector<1x128x32xf32>,
    return
  }
  func.func @transform_0(%arg0: i32, %arg1: i32) -> (i32, i32, i32) {
    %c0_i32 = arith.constant 0 : i32
    %c0_i32_0 = arith.constant 0 : i32
    return %arg0, %arg1, %c0_i32 : i32, i32, i32
  }
  func.func @transform_1(%arg0: i32, %arg1: i32) -> (i32, i32, i32) {
    %c0_i32 = arith.constant 0 : i32
    %c0_i32_0 = arith.constant 0 : i32
    %c0_i32_1 = arith.constant 0 : i32
    return %arg0, %c0_i32, %c0_i32_0 : i32, i32, i32
  }
  func.func @transform_2(%arg0: i32, %arg1: i32) -> (i32, i32) {
    %c0_i32 = arith.constant 0 : i32
    %c0_i32_0 = arith.constant 0 : i32
    %c0_i32_1 = arith.constant 0 : i32
    return %c0_i32, %c0_i32_0 : i32, i32
  }
  func.func @transform_3(%arg0: i32, %arg1: i32) -> (i32, i32) {
    %c0_i32 = arith.constant 0 : i32
    %c0_i32_0 = arith.constant 0 : i32
    %c0_i32_1 = arith.constant 0 : i32
    return %c0_i32, %c0_i32_0 : i32, i32
  }
  func.func @transform_4(%arg0: i32, %arg1: i32) -> (i32, i32) {
    %c0_i32 = arith.constant 0 : i32
    %c0_i32_0 = arith.constant 0 : i32
    %c0_i32_1 = arith.constant 0 : i32
    return %c0_i32, %c0_i32_0 : i32, i32
  }
  func.func @transform_5(%arg0: i32, %arg1: i32) -> (i32, i32) {
    %c0_i32 = arith.constant 0 : i32
    %c0_i32_0 = arith.constant 0 : i32
    %c0_i32_1 = arith.constant 0 : i32
    return %c0_i32, %c0_i32_0 : i32, i32
  }
  func.func @transform_6(%arg0: i32, %arg1: i32) -> (i32, i32) {
    %c0_i32 = arith.constant 0 : i32
    %c0_i32_0 = arith.constant 0 : i32
    %c0_i32_1 = arith.constant 0 : i32
    return %c0_i32, %c0_i32_0 : i32, i32
  }
  func.func @transform_7(%arg0: i32, %arg1: i32) -> (i32, i32, i32) {
    %c0_i32 = arith.constant 0 : i32
    %c0_i32_0 = arith.constant 0 : i32
    return %arg0, %arg1, %c0_i32 : i32, i32, i32
  }
}

</mosaic_0001>

<bundles_post_ra>
// kernel: tpu_custom_call.1
= control target key start
LH: loop header
LB: loop body
LE: loop exit
PB: predicated region body
PF: predicated region fallthrough
CT: control target
= control target key end

     0   :  { %s3648_s24 = smov 0   ;;  %s3650_s25 = smov 0   ;;  %s5303_s0 = inlined_call_operand.vmem [shape: f32[2,128,32], index: 0, kind: input, shape index: {}]   ;;  %s5304_s1 = inlined_call_operand.vmem [shape: f32[2,64,32], index: 1, kind: input, shape index: {}]   ;;  %s5305_s2 = inlined_call_operand.vmem [shape: f32[32,32], index: 2, kind: input, shape index: {}]   ;;  %s5306_s3 = inlined_call_operand.vmem [shape: f32[32,32], index: 3, kind: input, shape index: {}]   ;;  %s5307_s4 = inlined_call_operand.vmem [shape: f32[32,32], index: 4, kind: input, shape index: {}]   ;;  %s5308_s5 = inlined_call_operand.vmem [shape: f32[32,32], index: 5, kind: input, shape index: {}]   ;;  %s5309_s6 = inlined_call_operand.vmem [shape: f32[1,32], index: 6, kind: input, shape index: {}]   ;;  %s5310_s7 = inlined_call_operand.vmem [shape: f32[2,128,32], index: 7, kind: output, shape index: {}]  }
   0x1   :  { %s3652_s26 = smov 0  }
   0x2 LB: > { %s29_s27 = sadd.s32 1, %s3596_s25  ;;  %p2989_p0 = scmp.ge.s32.totalorder %s3600_s26, 1  ;;  %s3600_s26 = sphi %s3652_s26, %s17_s26   ;;  %s3596_s25 = sphi %s3650_s25, %s5363_s25   ;;  %s3592_s24 = sphi %s3648_s24, %s5362_s24  }
   0x3   : > { %p31_p1 = scmp.ge.s32.totalorder %s29_s27, 2  ;;  %p268_p2 = scmp.lt.s32.totalorder %s3600_s26, 3 }
   0x5   : > { %s5365_s27 = smov (%p31_p1, %s29_s27), 0  ;;  %p269_p3 = pnand %p2989_p0, %p268_p2 }
   0x7   : > { %272 = sbr.rel (%p269_p3) target bundleno = 1829 (0x725), region = 48 }
   0xc   : > { %v353_v0 = vld [vmem:[%s5306_s3 + $0x18] sm:$0xff]  ;;  %v352_v1 = vld [vmem:[%s5306_s3 + $0x10] sm:$0xff]  ;;  %p314_p4 = scmp.lt.s32.totalorder %s3592_s24, 1  ;;  %v351_v4 = vld [vmem:[%s5306_s3 + $0x8] sm:$0xff]  ;;  %vm354_vm0 = vcmask 261120   ;;  %vm649_vm1 = vcmask 64512  }
   0xd   : > { %391 = vmatpush.msra.mxu0 %v353_v0  ;;  %3209 = vmatpush.msra.mxu1 %v353_v0  ;;  %v501_v2 = vld [vmem:[%s5305_s2 + $0x18] sm:$0xff]  ;;  %v500_v3 = vld [vmem:[%s5305_s2 + $0x10] sm:$0xff]  ;;  %v499_v5 = vld [vmem:[%s5305_s2 + $0x8] sm:$0xff]  ;;  %s3602_s18 = smov 120   ;;  %s3604_s21 = smov 104   ;;  %vm787_vm2 = vcmask 523264  }
   0xe   : > { %s5367_s24 = smov (!%p314_p4, %s3592_s24), 1  ;;  %563 = vmatpush.msra.mxu2 %v501_v2  ;;  %v350_v6 = vld [vmem:[%s5306_s3] sm:$0xff]  ;;  %v431_v10 = vld [vmem:[%s5307_s4 + $0x18] sm:$0xff]  ;;  %v430_v12 = vld [vmem:[%s5307_s4 + $0x10] sm:$0xff]  ;;  %s3605_s22 = smov 8   ;;  %vm2715_vm3 = vcmask 130048  }
   0xf   : > { %392 = vmatpush.msra.mxu0 %v352_v1  ;;  %3210 = vmatpush.msra.mxu1 %v352_v1  ;;  %s3206_s19 = sshll.u32 %s5367_s24, 7  ;;  %s3207_s20 = sshll.u32 %s5367_s24, 6  ;;  %v498_v7 = vld [vmem:[%s5305_s2] sm:$0xff]  ;;  %v429_v13 = vld [vmem:[%s5307_s4 + $0x8] sm:$0xff]  ;;  %vm2732_vm4 = vcmask 195584  }
  0x10   : > { %564 = vmatpush.msra.mxu2 %v500_v3  ;;  %s3696_s23 = scalar_lea.vmem %s5303_s0, %s3206_s19  ;;  %s3701_s30 = scalar_lea.vmem %s5304_s1, %s3207_s20  ;;  %v428_v14 = vld [vmem:[%s5307_s4] sm:$0xff] }
  0x11   : > { %393 = vmatpush.msra.mxu0 %v351_v4  ;;  %3211 = vmatpush.msra.mxu1 %v351_v4  ;;  %v342_v8 = vld [vmem:[%s3701_s30] sm:$0xff]  ;;  %v349_v9 = vld [vmem:[%s3701_s30 + $0x38] sm:$0xff]  ;;  %v343_v15 = vld [vmem:[%s3701_s30 + $0x8] sm:$0xff]  ;;  %s3603_s20 = smov 112   ;;  %s3607_s28 = smov 24  }
  0x12   : > { %565 = vmatpush.msra.mxu2 %v499_v5  ;;  %v482_v11 = vld [vmem:[%s3696_s23] sm:$0xff]  ;;  %v483_v16 = vld [vmem:[%s3696_s23 + $0x8] sm:$0xff]  ;;  %v344_v17 = vld [vmem:[%s3701_s30 + $0x10] sm:$0xff] }
  0x13   : > { %394 = vmatpush.msra.mxu0 %v350_v6  ;;  %3212 = vmatpush.msra.mxu1 %v350_v6  ;;  %v484_v18 = vld [vmem:[%s3696_s23 + $0x10] sm:$0xff]  ;;  %v345_v19 = vld [vmem:[%s3701_s30 + $0x18] sm:$0xff]  ;;  %v346_v21 = vld [vmem:[%s3701_s30 + $0x20] sm:$0xff] }
  0x14   : > { %2996 = vmatmul.msk.f32.vlgmr.msra.gmra.mxu0 %vm354_vm0, %v342_v8  ;;  %3003 = vmatmul.msk.f32.vlgmr.msra.gmra.mxu1 %vm354_vm0, %v349_v9  ;;  %v485_v20 = vld [vmem:[%s3696_s23 + $0x18] sm:$0xff]  ;;  %v486_v22 = vld [vmem:[%s3696_s23 + $0x20] sm:$0xff]  ;;  %v347_v23 = vld [vmem:[%s3701_s30 + $0x28] sm:$0xff] }
  0x15   : > { %566 = vmatpush.msra.mxu2 %v498_v7  ;;  %444 = vmatpush.msrb.mxu1 %v431_v10  ;;  %v487_v24 = vld [vmem:[%s3696_s23 + $0x28] sm:$0xff]  ;;  %v348_v25 = vld [vmem:[%s3701_s30 + $0x30] sm:$0xff]  ;;  %v489_v27 = vld [vmem:[%s3696_s23 + $0x38] sm:$0xff] }
  0x16   : > { %3012 = vmatmul.msk.f32.vlgmr.msra.gmra.mxu2 %vm354_vm0, %v482_v11  ;;  %v488_v26 = vld [vmem:[%s3696_s23 + $0x30] sm:$0xff]  ;;  %v490_v28 = vld [vmem:[%s3696_s23 + $0x40] sm:$0xff]  ;;  %v491_v29 = vld [vmem:[%s3696_s23 + $0x48] sm:$0xff] }
  0x17   : > { %445 = vmatpush.msrb.mxu1 %v430_v12  ;;  %v492_v30 = vld [vmem:[%s3696_s23 + $0x50] sm:$0xff]  ;;  %v493_v31 = vld [vmem:[%s3696_s23 + $0x58] sm:$0xff]  ;;  %v494_v32 = vld [vmem:[%s3696_s23 + $0x60] sm:$0xff] }
  0x18   : > { %v495_v33 = vld [vmem:[%s3696_s23 + $0x68] sm:$0xff]  ;;  %v496_v34 = vld [vmem:[%s3696_s23 + $0x70] sm:$0xff]  ;;  %v497_v40 = vld [vmem:[%s3696_s23 + $0x78] sm:$0xff]  ;;  %s3606_s23 = smov 16  }
  0x19   : > { %446 = vmatpush.msrb.mxu1 %v429_v13 }
  0x1b   : > { %447 = vmatpush.msrb.mxu1 %v428_v14 }
  0x1c   : > { %2997 = vmatmul.msk.f32.gmra.mxu0 %vm354_vm0, %v343_v15  ;;  %3004 = vmatmul.msk.f32.vlgmr.msrb.gmra.mxu1 %vm354_vm0, %v342_v8 }
  0x1e   : > { %3013 = vmatmul.msk.f32.gmra.mxu2 %vm354_vm0, %v483_v16 }
  0x24   : > { %2998 = vmatmul.msk.f32.gmra.mxu0 %vm354_vm0, %v344_v17  ;;  %3005 = vmatmul.msk.f32.gmra.mxu1 %vm354_vm0, %v343_v15 }
  0x26   : > { %3014 = vmatmul.msk.f32.gmra.mxu2 %vm354_vm0, %v484_v18 }
  0x2c   : > { %2999 = vmatmul.msk.f32.gmra.mxu0 %vm354_vm0, %v345_v19  ;;  %3006 = vmatmul.msk.f32.gmra.mxu1 %vm354_vm0, %v344_v17 }
  0x2e   : > { %3015 = vmatmul.msk.f32.gmra.mxu2 %vm354_vm0, %v485_v20 }
  0x34   : > { %3000 = vmatmul.msk.f32.gmra.mxu0 %vm354_vm0, %v346_v21  ;;  %3007 = vmatmul.msk.f32.gmra.mxu1 %vm354_vm0, %v345_v19 }
  0x36   : > { %3016 = vmatmul.msk.f32.gmra.mxu2 %vm354_vm0, %v486_v22 }
  0x3c   : > { %3001 = vmatmul.msk.f32.gmra.mxu0 %vm354_vm0, %v347_v23  ;;  %3008 = vmatmul.msk.f32.gmra.mxu1 %vm354_vm0, %v346_v21 }
  0x3e   : > { %3017 = vmatmul.msk.f32.gmra.mxu2 %vm354_vm0, %v487_v24 }
  0x44   : > { %3002 = vmatmul.msk.f32.gmra.mxu0 %vm354_vm0, %v348_v25  ;;  %3009 = vmatmul.msk.f32.gmra.mxu1 %vm354_vm0, %v347_v23 }
  0x46   : > { %3018 = vmatmul.msk.f32.gmra.mxu2 %vm354_vm0, %v488_v26 }
  0x4c   : > { %3010 = vmatmul.msk.f32.gmra.mxu1 %vm354_vm0, %v348_v25 }
  0x4e   : > { %3019 = vmatmul.msk.f32.gmra.mxu2 %vm354_vm0, %v489_v27 }
  0x54   : > { %3011 = vmatmul.msk.f32.gmra.mxu1 %vm354_vm0, %v349_v9 }
  0x56   : > { %3020 = vmatmul.msk.f32.gmra.mxu2 %vm354_vm0, %v490_v28 }
  0x5e   : > { %3021 = vmatmul.msk.f32.gmra.mxu2 %vm354_vm0, %v491_v29 }
  0x66   : > { %3022 = vmatmul.msk.f32.gmra.mxu2 %vm354_vm0, %v492_v30 }
  0x6e   : > { %3023 = vmatmul.msk.f32.gmra.mxu2 %vm354_vm0, %v493_v31 }
  0x76   : > { %3024 = vmatmul.msk.f32.gmra.mxu2 %vm354_vm0, %v494_v32 }
  0x7e   : > { %3025 = vmatmul.msk.f32.gmra.mxu2 %vm354_vm0, %v495_v33 }
  0x86   : > { %3026 = vmatmul.msk.f32.gmra.mxu2 %vm354_vm0, %v496_v34 }
  0x8e   : > { %3027 = vmatmul.msk.f32.gmra.mxu2 %vm354_vm0, %v497_v40 }
  0x91   : > { %v396_v35 = vpop.f32.mrf.mxu0  ;;  %v417_v36 = vpop.f32.mrf.mxu1 }
  0x92   : > { %420 = vst.msk [vmem:[#allocation2] sm:$0xff] %vm354_vm0, %v396_v35 }
  0x93   : > { %427 = vst.msk [vmem:[#allocation2 + $0x38] sm:$0xff] %vm354_vm0, %v417_v36 }
  0x99   : > { %v399_v37 = vpop.f32.mrf.mxu0  ;;  %v3774_v38 = vld [vmem:[#allocation2] sm:$0xff]  ;;  %v568_v39 = vpop.f32.mrf.mxu2 }
  0x9a   : > { %421 = vst.msk [vmem:[#allocation2 + $0x8] sm:$0xff] %vm354_vm0, %v399_v37  ;;  %v639_v41 = vld [vmem:[#allocation2 + $0x38] sm:$0xff]  ;;  %1109 = vrot.lane.b32.xlu1 %v3774_v38, %s3602_s18  ;;  %v3780_v42 = vmul.f32 0.35355338, %v568_v39  ;;  %v449_v43 = vpop.f32.mrf.mxu1 }
  0x9b   : > { %1123 = vrot.lane.b32.xlu0 %v639_v41, %s3602_s18  ;;  %474 = vst.msk [vmem:[#allocation2 + $0x40] sm:$0xff] %vm354_vm0, %v449_v43  ;;  %3028 = vmatpush.xpose.msk.msrb.mxu0 %vm649_vm1, %v639_v41 }
  0x9c   : > { %3213 = vmatpush.xpose.msk.msra.mxu3 %vm649_vm1, %v639_v41  ;;  %1559 = vrot.lane.b32.xlu2 %v3780_v42, %s3603_s20 }
  0xa1   : > { %v402_v44 = vpop.f32.mrf.mxu0  ;;  %v3789_v45 = vld [vmem:[#allocation2 + $0x8] sm:$0xff]  ;;  %v571_v46 = vpop.f32.mrf.mxu2 }
  0xa2   : > { %422 = vst.msk [vmem:[#allocation2 + $0x10] sm:$0xff] %vm354_vm0, %v402_v44  ;;  %1605 = vrot.lane.b32.xlu1 %v639_v41, %s3603_s20  ;;  %v452_v47 = vpop.f32.mrf.mxu1  ;;  %v3798_v48 = vmul.f32 0.35355338, %v571_v46  ;;  %v641_v5 = vld [vmem:[#allocation2 + $0x40] sm:$0xff] }
  0xa3   : > { %1077 = vrot.lane.b32.xlu0 %v3780_v42, %s3602_s18  ;;  %475 = vst.msk [vmem:[#allocation2 + $0x48] sm:$0xff] %vm354_vm0, %v452_v47 }
  0xa4   : > { %2067 = vrot.lane.b32.xlu2 %v3789_v45, %s3604_s21 }
  0xa9   : > { %v405_v49 = vpop.f32.mrf.mxu0  ;;  %v574_v50 = vpop.f32.mrf.mxu2  ;;  %v634_v53 = vld [vmem:[#allocation2 + $0x10] sm:$0xff] }
  0xaa   : > { %423 = vst.msk [vmem:[#allocation2 + $0x18] sm:$0xff] %vm354_vm0, %v405_v49  ;;  %1591 = vrot.lane.b32.xlu1 %v3774_v38, %s3603_s20  ;;  %v455_v51 = vpop.f32.mrf.mxu1  ;;  %v3835_v0 = vmul.f32 0.35355338, %v574_v50  ;;  %v642_v6 = vld [vmem:[#allocation2 + $0x48] sm:$0xff] }
  0xab   : > { %2079 = vrot.lane.b32.xlu0 %v639_v41, %s3604_s21  ;;  %476 = vst.msk [vmem:[#allocation2 + $0x50] sm:$0xff] %vm354_vm0, %v455_v51  ;;  %v3259_v9 = vpack.i.bf16 %v641_v5, %v642_v6 }
  0xac   : > { %2035 = vrot.lane.b32.xlu2 %v3798_v48, %s3604_s21 }
  0xb1   : > { %v408_v52 = vpop.f32.mrf.mxu0  ;;  %v577_v54 = vpop.f32.mrf.mxu2  ;;  %v3814_v57 = vld [vmem:[#allocation2 + $0x18] sm:$0xff] }
  0xb2   : > { %424 = vst.msk [vmem:[#allocation2 + $0x20] sm:$0xff] %vm354_vm0, %v408_v52  ;;  %2033 = vrot.lane.b32.xlu1 %v3780_v42, %s3604_s21  ;;  %v458_v55 = vpop.f32.mrf.mxu1  ;;  %v3824_v60 = vmul.f32 0.35355338, %v577_v54  ;;  %v643_v13 = vld [vmem:[#allocation2 + $0x50] sm:$0xff] }
  0xb3   : > { %2065 = vrot.lane.b32.xlu0 %v3774_v38, %s3604_s21  ;;  %477 = vst.msk [vmem:[#allocation2 + $0x58] sm:$0xff] %vm354_vm0, %v458_v55 }
  0xb4   : > { %2069 = vrot.lane.b32.xlu2 %v634_v53, %s3604_s21 }
  0xb9   : > { %v411_v56 = vpop.f32.mrf.mxu0  ;;  %v580_v59 = vpop.f32.mrf.mxu2  ;;  %v636_v7 = vld [vmem:[#allocation2 + $0x20] sm:$0xff] }
  0xba   : > { %425 = vst.msk [vmem:[#allocation2 + $0x28] sm:$0xff] %vm354_vm0, %v411_v56  ;;  %1079 = vrot.lane.b32.xlu1 %v3798_v48, %s3602_s18  ;;  %v461_v58 = vpop.f32.mrf.mxu1  ;;  %v3837_v1 = vmul.f32 0.35355338, %v580_v59  ;;  %v644_v11 = vld [vmem:[#allocation2 + $0x58] sm:$0xff] }
  0xbb   : > { %1111 = vrot.lane.b32.xlu0 %v3789_v45, %s3602_s18  ;;  %478 = vst.msk [vmem:[#allocation2 + $0x60] sm:$0xff] %vm354_vm0, %v461_v58  ;;  %v3872_v14 = vpack.i.bf16 %v643_v13, %v644_v11 }
  0xbc   : > { %1115 = vrot.lane.b32.xlu2 %v3814_v57, %s3602_s18 }
  0xc1   : > { %v414_v61 = vpop.f32.mrf.mxu0  ;;  %v3833_v63 = vpop.f32.mrf.mxu2  ;;  %v3849_v4 = vld [vmem:[#allocation2 + $0x28] sm:$0xff] }
  0xc2   : > { %426 = vst.msk [vmem:[#allocation2 + $0x30] sm:$0xff] %vm354_vm0, %v414_v61  ;;  %1113 = vrot.lane.b32.xlu1 %v634_v53, %s3602_s18  ;;  %v464_v62 = vpop.f32.mrf.mxu1  ;;  %v645_v20 = vld [vmem:[#allocation2 + $0x60] sm:$0xff]  ;;  %v621_v29 = vmul.f32 0.35355338, %v3833_v63 }
  0xc3   : > { %1593 = vrot.lane.b32.xlu0 %v3789_v45, %s3603_s20  ;;  %479 = vst.msk [vmem:[#allocation2 + $0x68] sm:$0xff] %vm354_vm0, %v464_v62 }
  0xc4   : > { %1565 = vrot.lane.b32.xlu2 %v3824_v60, %s3603_s20 }
  0xc9   : > { %v3839_v2 = vld [vmem:[#allocation2 + $0x30] sm:$0xff]  ;;  %v586_v8 = vpop.f32.mrf.mxu2 }
  0xca   : > { %3029 = vmatpush.xpose.msk.msrb.mxu0 %vm649_vm1, %v3839_v2  ;;  %3214 = vmatpush.xpose.msk.msra.mxu3 %vm649_vm1, %v3839_v2  ;;  %v467_v3 = vpop.f32.mrf.mxu1  ;;  %v3885_v16 = vmul.f32 0.35355338, %v586_v8  ;;  %v646_v19 = vld [vmem:[#allocation2 + $0x68] sm:$0xff] }
  0xcb   : > { %1561 = vrot.lane.b32.xlu0 %v3798_v48, %s3603_s20  ;;  %1563 = vrot.lane.b32.xlu1 %v3835_v0, %s3603_s20  ;;  %480 = vst.msk [vmem:[#allocation2 + $0x70] sm:$0xff] %vm354_vm0, %v467_v3  ;;  %v3905_v21 = vpack.i.bf16 %v645_v20, %v646_v19 }
  0xcc   : > { %2041 = vrot.lane.b32.xlu2 %v3837_v1, %s3604_s21 }
  0xce   : > { %3030 = vmatpush.xpose.msk.msrb.mxu0 %vm649_vm1, %v3849_v4  ;;  %3215 = vmatpush.xpose.msk.msra.mxu3 %vm649_vm1, %v3849_v4 }
  0xd1   : > { %v589_v12 = vpop.f32.mrf.mxu2 }
  0xd2   : > { %3031 = vmatpush.xpose.msk.msrb.mxu0 %vm649_vm1, %v636_v7  ;;  %3216 = vmatpush.xpose.msk.msra.mxu3 %vm649_vm1, %v636_v7  ;;  %v470_v10 = vpop.f32.mrf.mxu1  ;;  %v3895_v17 = vld [vmem:[#allocation2 + $0x70] sm:$0xff]  ;;  %v3907_v22 = vmul.f32 0.35355338, %v589_v12 }
  0xd3   : > { %3260 = vrot.lane.b32.xlu1 %v3259_v9, %s3602_s18  ;;  %1081 = vrot.lane.b32.xlu0 %v3835_v0, %s3602_s18  ;;  %481 = vst.msk [vmem:[#allocation2 + $0x78] sm:$0xff] %vm354_vm0, %v470_v10 }
  0xd4   : > { %1119 = vrot.lane.b32.xlu2 %v3849_v4, %s3602_s18 }
  0xd6   : > { %3032 = vmatpush.xpose.msk.msrb.mxu0 %vm649_vm1, %v3814_v57  ;;  %3217 = vmatpush.xpose.msk.msra.mxu3 %vm649_vm1, %v3814_v57 }
  0xd9   : > { %v592_v18 = vpop.f32.mrf.mxu2 }
  0xda   : > { %3033 = vmatpush.xpose.msk.msrb.mxu0 %vm649_vm1, %v634_v53  ;;  %3218 = vmatpush.xpose.msk.msra.mxu3 %vm649_vm1, %v634_v53  ;;  %v3883_v15 = vld [vmem:[#allocation2 + $0x78] sm:$0xff]  ;;  %v3919_v24 = vmul.f32 0.35355338, %v592_v18 }
  0xdb   : > { %1595 = vrot.lane.b32.xlu0 %v634_v53, %s3603_s20  ;;  %1083 = vrot.lane.b32.xlu1 %v3824_v60, %s3602_s18  ;;  %v3274_v49 = vpack.i.bf16 %v3895_v17, %v3883_v15 }
  0xdc   : > { %2075 = vrot.lane.b32.xlu2 %v3849_v4, %s3604_s21 }
  0xde   : > { %3034 = vmatpush.xpose.msk.msrb.mxu0 %vm649_vm1, %v3789_v45  ;;  %3219 = vmatpush.xpose.msk.msra.mxu3 %vm649_vm1, %v3789_v45 }
  0xe1   : > { %v595_v23 = vpop.f32.mrf.mxu2 }
  0xe2   : > { %3035 = vmatpush.xpose.msk.msrb.mxu0 %vm649_vm1, %v3774_v38  ;;  %3220 = vmatpush.xpose.msk.msra.mxu3 %vm649_vm1, %v3774_v38  ;;  %v3930_v26 = vmul.f32 0.35355338, %v595_v23 }
  0xe3   : > { %2037 = vrot.lane.b32.xlu0 %v3835_v0, %s3604_s21  ;;  %2071 = vrot.lane.b32.xlu1 %v3814_v57, %s3604_s21 }
  0xe4   : > { %1571 = vrot.lane.b32.xlu2 %v3885_v16, %s3603_s20 }
  0xe5   : > { %3036 = vmatmul.msk.f32.vlgmr.msrb.gmra.mxu0 %vm649_vm1, %v3780_v42  ;;  %3042 = vmatmul.msk.f32.vlgmr.msra.gmra.mxu3 %vm649_vm1, %v3885_v16 }
  0xe6   : > { %988 = vmatpush.msra.mxu0 %v3883_v15 }
  0xe8   : > { %989 = vmatpush.msra.mxu0 %v3895_v17 }
  0xe9   : > { %v598_v25 = vpop.f32.mrf.mxu2 }
  0xea   : > { %990 = vmatpush.msra.mxu0 %v646_v19  ;;  %v3940_v27 = vmul.f32 0.35355338, %v598_v25 }
  0xeb   : > { %1597 = vrot.lane.b32.xlu0 %v3814_v57, %s3603_s20  ;;  %2039 = vrot.lane.b32.xlu1 %v3824_v60, %s3604_s21 }
  0xec   : > { %991 = vmatpush.msra.mxu0 %v645_v20  ;;  %3270 = vrot.lane.b32.xlu2 %v3905_v21, %s3602_s18 }
  0xed   : > { %3037 = vmatmul.msk.f32.gmra.mxu0 %vm649_vm1, %v3798_v48  ;;  %3043 = vmatmul.msk.f32.gmra.mxu3 %vm649_vm1, %v3907_v22 }
  0xee   : > { %992 = vmatpush.msra.mxu0 %v644_v11 }
  0xf0   : > { %993 = vmatpush.msra.mxu0 %v643_v13 }
  0xf1   : > { %v601_v28 = vpop.f32.mrf.mxu2 }
  0xf2   : > { %994 = vmatpush.msra.mxu0 %v642_v6  ;;  %v627_v30 = vmul.f32 0.35355338, %v601_v28 }
  0xf3   : > { %1117 = vrot.lane.b32.xlu0 %v636_v7, %s3602_s18  ;;  %1085 = vrot.lane.b32.xlu1 %v3837_v1, %s3602_s18 }
  0xf4   : > { %995 = vmatpush.msra.mxu0 %v641_v5  ;;  %1091 = vrot.lane.b32.xlu2 %v3907_v22, %s3602_s18 }
  0xf5   : > { %3038 = vmatmul.msk.f32.gmra.mxu0 %vm649_vm1, %v3835_v0  ;;  %3044 = vmatmul.msk.f32.gmra.mxu3 %vm649_vm1, %v3919_v24 }
  0xf6   : > { %v4034_v56 = vpop.permute.xlu2 %1559 }
  0xf9   : > { %v604_v31 = vpop.f32.mrf.mxu2 }
  0xfa   : > { %v628_v34 = vmul.f32 0.35355338, %v604_v31 }
  0xfb   : > { %2073 = vrot.lane.b32.xlu0 %v636_v7, %s3604_s21  ;;  %1599 = vrot.lane.b32.xlu1 %v636_v7, %s3603_s20 }
  0xfc   : > { %2047 = vrot.lane.b32.xlu2 %v3907_v22, %s3604_s21 }
  0xfd   : > { %3039 = vmatmul.msk.f32.gmra.mxu0 %vm649_vm1, %v3824_v60  ;;  %3045 = vmatmul.msk.f32.gmra.mxu3 %vm649_vm1, %v3930_v26 }
  0xfe   : > { %v4046_v59 = vpop.permute.xlu2 %2067 }
 0x101   : > { %v607_v37 = vpop.f32.mrf.mxu2 }
 0x102   : > { %v3971_v38 = vmul.f32 0.35355338, %v607_v37 }
 0x103   : > { %1567 = vrot.lane.b32.xlu0 %v3837_v1, %s3603_s20  ;;  %3265 = vrot.lane.b32.xlu1 %v3872_v14, %s3602_s18 }
 0x104   : > { %2049 = vrot.lane.b32.xlu2 %v3919_v24, %s3604_s21 }
 0x105   : > { %3040 = vmatmul.msk.f32.gmra.mxu0 %vm649_vm1, %v3837_v1  ;;  %3046 = vmatmul.msk.f32.gmra.mxu3 %vm649_vm1, %v3940_v27 }
 0x106   : > { %v4058_v0 = vpop.permute.xlu2 %2035 }
 0x109   : > { %v610_v41 = vpop.f32.mrf.mxu2 }
 0x10a   : > { %v3984_v42 = vmul.f32 0.35355338, %v610_v41 }
 0x10b   : > { %1601 = vrot.lane.b32.xlu0 %v3849_v4, %s3603_s20  ;;  %1087 = vrot.lane.b32.xlu1 %v621_v29, %s3602_s18 }
 0x10c   : > { %v3956_v32 = vpop.permute.xlu1 %1109  ;;  %1095 = vrot.lane.b32.xlu2 %v3930_v26, %s3602_s18 }
 0x10d   : > { %v1124_v33 = vpop.permute.xlu0 %1123  ;;  %3041 = vmatmul.msk.f32.gmra.mxu0 %vm649_vm1, %v621_v29  ;;  %3047 = vmatmul.msk.f32.gmra.mxu3 %vm649_vm1, %v627_v30 }
 0x10e   : > { %3068 = vmatpush.xpose.msk.msra.mxu1 %vm649_vm1, %v1124_v33  ;;  %v4067_v4 = vpop.permute.xlu2 %2069 }
 0x111   : > { %v613_v45 = vpop.f32.mrf.mxu2 }
 0x112   : > { %v631_v46 = vmul.f32 0.35355338, %v613_v45 }
 0x113   : > { %2043 = vrot.lane.b32.xlu0 %v621_v29, %s3604_s21  ;;  %1569 = vrot.lane.b32.xlu1 %v621_v29, %s3603_s20 }
 0x114   : > { %v1606_v35 = vpop.permute.xlu1 %1605  ;;  %1097 = vrot.lane.b32.xlu2 %v3940_v27, %s3602_s18 }
 0x115   : > { %v3967_v36 = vpop.permute.xlu0 %1077  ;;  %3108 = vmatpush.xpose.msk.msrb.mxu3 %vm649_vm1, %v1606_v35 }
 0x116   : > { %3048 = vmatmul.msk.f32.gmra.mxu3 %vm649_vm1, %v628_v34  ;;  %v1116_v9 = vpop.permute.xlu2 %1115 }
 0x11b   : > { %1603 = vrot.lane.b32.xlu0 %v3839_v2, %s3603_s20  ;;  %1121 = vrot.lane.b32.xlu1 %v3839_v2, %s3602_s18 }
 0x11c   : > { %v3977_v39 = vpop.permute.xlu1 %1591  ;;  %1581 = vrot.lane.b32.xlu2 %v627_v30, %s3603_s20 }
 0x11d   : > { %v3980_v40 = vpop.permute.xlu0 %2079 }
 0x11e   : > { %3049 = vmatmul.msk.f32.gmra.mxu3 %vm649_vm1, %v3971_v38  ;;  %v4093_v17 = vpop.permute.xlu2 %1565 }
 0x123   : > { %2077 = vrot.lane.b32.xlu0 %v3839_v2, %s3604_s21  ;;  %1089 = vrot.lane.b32.xlu1 %v3885_v16, %s3602_s18 }
 0x124   : > { %v3990_v43 = vpop.permute.xlu1 %2033  ;;  %1583 = vrot.lane.b32.xlu2 %v628_v34, %s3603_s20 }
 0x125   : > { %v3993_v44 = vpop.permute.xlu0 %2065 }
 0x126   : > { %3050 = vmatmul.msk.f32.gmra.mxu3 %vm649_vm1, %v3984_v42  ;;  %v4103_v23 = vpop.permute.xlu2 %2041 }
 0x12b   : > { %2045 = vrot.lane.b32.xlu1 %v3885_v16, %s3604_s21  ;;  %1573 = vrot.lane.b32.xlu0 %v3907_v22, %s3603_s20 }
 0x12c   : > { %v4001_v47 = vpop.permute.xlu1 %1079  ;;  %2057 = vrot.lane.b32.xlu2 %v628_v34, %s3604_s21 }
 0x12d   : > { %v4004_v48 = vpop.permute.xlu0 %1111 }
 0x12e   : > { %3051 = vmatmul.msk.f32.gmra.mxu3 %vm649_vm1, %v631_v46  ;;  %v1120_v29 = vpop.permute.xlu2 %1119 }
 0x133   : > { %3275 = vrot.lane.b32.xlu1 %v3274_v49, %s3602_s18  ;;  %1093 = vrot.lane.b32.xlu0 %v3919_v24, %s3602_s18 }
 0x134   : > { %v4012_v50 = vpop.permute.xlu1 %1113  ;;  %1585 = vrot.lane.b32.xlu2 %v3971_v38, %s3603_s20 }
 0x135   : > { %v4016_v51 = vpop.permute.xlu0 %1593 }
 0x13b   : > { %1575 = vrot.lane.b32.xlu1 %v3919_v24, %s3603_s20  ;;  %2053 = vrot.lane.b32.xlu0 %v3940_v27, %s3604_s21 }
 0x13c   : > { %2063 = vrot.lane.b32.xlu2 %v631_v46, %s3604_s21 }
 0x13d   : > { %v4023_v52 = vpop.permute.xlu0 %1561  ;;  %v4025_v53 = vpop.permute.xlu1 %1563 }
 0x143   : > { %1577 = vrot.lane.b32.xlu1 %v3930_v26, %s3603_s20  ;;  %1099 = vrot.lane.b32.xlu0 %v627_v30, %s3602_s18 }
 0x145   : > { %v4030_v54 = vpop.permute.xlu1 %3260  ;;  %v4032_v55 = vpop.permute.xlu0 %1081 }
 0x14b   : > { %2051 = vrot.lane.b32.xlu1 %v3930_v26, %s3604_s21  ;;  %2055 = vrot.lane.b32.xlu0 %v627_v30, %s3604_s21 }
 0x14d   : > { %v4039_v57 = vpop.permute.xlu0 %1595  ;;  %v4041_v58 = vpop.permute.xlu1 %1083 }
 0x153   : > { %1579 = vrot.lane.b32.xlu1 %v3940_v27, %s3603_s20  ;;  %1101 = vrot.lane.b32.xlu0 %v628_v34, %s3602_s18 }
 0x155   : > { %v4048_v60 = vpop.permute.xlu0 %2037  ;;  %v4050_v61 = vpop.permute.xlu1 %2071 }
 0x15b   : > { %1103 = vrot.lane.b32.xlu1 %v3971_v38, %s3602_s18  ;;  %1587 = vrot.lane.b32.xlu0 %v3984_v42, %s3603_s20 }
 0x15d   : > { %v1598_v62 = vpop.permute.xlu0 %1597  ;;  %v4056_v63 = vpop.permute.xlu1 %2039 }
 0x162   : > { %v4060_v1 = vpop.f32.mrf.mxu0 }
 0x163   : > { %1105 = vrot.lane.b32.xlu1 %v3984_v42, %s3602_s18  ;;  %1589 = vrot.lane.b32.xlu0 %v631_v46, %s3603_s20 }
 0x165   : > { %v1118_v2 = vpop.permute.xlu0 %1117  ;;  %v4065_v3 = vpop.permute.xlu1 %1085 }
 0x168   : > { %v4069_v5 = vpop.f32.mrf.mxu3 }
 0x16a   : > { %v4071_v6 = vpop.f32.mrf.mxu0 }
 0x16b   : > { %3280 = vrot.lane.b32.xlu0 %v3274_v49, %s3603_s20  ;;  %1107 = vrot.lane.b32.xlu1 %v631_v46, %s3602_s18  ;;  %v788_v46 = vsel %vm787_vm2, %v4060_v1, -inf  ;;  %s5074_s18 = scalar_lea.vmem %s5310_s7, %s3206_s19 }
 0x16d   : > { %v4075_v7 = vpop.permute.xlu0 %2073  ;;  %v1600_v8 = vpop.permute.xlu1 %1599 }
 0x170   : > { %v4077_v10 = vpop.f32.mrf.mxu3 }
 0x172   : > { %v4079_v11 = vpop.f32.mrf.mxu0 }
 0x173   : > { %3290 = vrot.lane.b32.xlu0 %v3905_v21, %s3603_s20  ;;  %2059 = vrot.lane.b32.xlu1 %v3971_v38, %s3604_s21 }
 0x175   : > { %v4085_v12 = vpop.permute.xlu0 %1567  ;;  %v4087_v13 = vpop.permute.xlu1 %3265 }
 0x178   : > { %v4089_v15 = vpop.f32.mrf.mxu3 }
 0x179   : > { %v812_v16 = vsel %vm787_vm2, %v4089_v15, -inf }
 0x17a   : > { %v4095_v18 = vpop.f32.mrf.mxu0  ;;  %813 = vmax.xlane.f32.xlu2 %v812_v16 }
 0x17b   : > { %2061 = vrot.lane.b32.xlu1 %v3984_v42, %s3604_s21 }
 0x17d   : > { %v1602_v19 = vpop.permute.xlu0 %1601  ;;  %v4099_v20 = vpop.permute.xlu1 %1087 }
 0x180   : > { %v4101_v22 = vpop.f32.mrf.mxu3 }
 0x182   : > { %v4105_v24 = vpop.f32.mrf.mxu0 }
 0x183   : > { %3285 = vrot.lane.b32.xlu1 %v3274_v49, %s3604_s21  ;;  %v800_v25 = vsel %vm787_vm2, %v4105_v24, -inf }
 0x184   : > { %801 = vmax.xlane.f32.xlu2 %v800_v25 }
 0x185   : > { %v4110_v26 = vpop.permute.xlu0 %2043  ;;  %v4112_v27 = vpop.permute.xlu1 %1569 }
 0x188   : > { %v4114_v28 = vpop.f32.mrf.mxu3 }
 0x18a   : > { %v4116_v30 = vpop.f32.mrf.mxu0 }
 0x18b   : > { %3295 = vrot.lane.b32.xlu1 %v3905_v21, %s3604_s21  ;;  %v803_v31 = vsel %vm787_vm2, %v4116_v30, -inf  ;;  %v2076_v21 = vpop.permute.xlu2 %2075 }
 0x18c   : > { %804 = vmax.xlane.f32.xlu2 %v803_v31  ;;  %v3262_v31 = vunpack.i.l.bf16 %v4030_v54 }
 0x18d   : > { %v1604_v33 = vpop.permute.xlu0 %1603  ;;  %v1122_v34 = vpop.permute.xlu1 %1121 }
 0x18e   : > { %3069 = vmatpush.xpose.msk.msra.mxu1 %vm649_vm1, %v1122_v34  ;;  %3109 = vmatpush.xpose.msk.msrb.mxu3 %vm649_vm1, %v1604_v33  ;;  %v815_v33 = vsel %vm787_vm2, %v4101_v22, -inf  ;;  %v809_v34 = vsel %vm787_vm2, %v4077_v10, -inf }
 0x190   : > { %v4124_v35 = vpop.f32.mrf.mxu3 }
 0x191   : > { %v821_v37 = vsel %vm787_vm2, %v4124_v35, -inf }
 0x192   : > { %3070 = vmatpush.xpose.msk.msra.mxu1 %vm649_vm1, %v1120_v29  ;;  %3110 = vmatpush.xpose.msk.msrb.mxu3 %vm649_vm1, %v1602_v19  ;;  %v3268_v29 = vunpack.i.h.bf16 %v4087_v13 }
 0x193   : > { %v4138_v45 = vpop.permute.xlu2 %1571 }
 0x194   : > { %822 = vmax.xlane.f32.xlu2 %v821_v37 }
 0x195   : > { %v2078_v38 = vpop.permute.xlu0 %2077  ;;  %v4130_v41 = vpop.permute.xlu1 %1089 }
 0x196   : > { %3071 = vmatpush.xpose.msk.msra.mxu1 %vm649_vm1, %v1118_v2  ;;  %3111 = vmatpush.xpose.msk.msrb.mxu3 %vm649_vm1, %v1600_v8 }
 0x199   : > { %v4134_v42 = vpop.f32.mrf.mxu3 }
 0x19a   : > { %3072 = vmatpush.xpose.msk.msra.mxu1 %vm649_vm1, %v1116_v9  ;;  %3112 = vmatpush.xpose.msk.msrb.mxu3 %vm649_vm1, %v1598_v62  ;;  %v806_v62 = vsel %vm787_vm2, %v4069_v5, -inf }
 0x19b   : > { %v3271_v19 = vpop.permute.xlu2 %3270 }
 0x19d   : > { %v4142_v49 = vpop.permute.xlu1 %2045  ;;  %v4144_v16 = vpop.permute.xlu0 %1573  ;;  %789 = vmax.xlane.f32.xlu0 %v788_v46 }
 0x19e   : > { %3073 = vmatpush.xpose.msk.msra.mxu1 %vm649_vm1, %v4012_v50  ;;  %3113 = vmatpush.xpose.msk.msrb.mxu3 %vm649_vm1, %v4039_v57 }
 0x1a1   : > { %v4150_v2 = vpop.f32.mrf.mxu3 }
 0x1a2   : > { %3074 = vmatpush.xpose.msk.msra.mxu1 %vm649_vm1, %v4004_v48  ;;  %3114 = vmatpush.xpose.msk.msrb.mxu3 %vm649_vm1, %v4016_v51  ;;  %v3272_v48 = vunpack.i.l.bf16 %v3271_v19 }
 0x1a5   : > { %v3276_v8 = vpop.permute.xlu1 %3275  ;;  %v4158_v9 = vpop.permute.xlu0 %1093  ;;  %807 = vmax.xlane.f32.xlu0 %v806_v62 }
 0x1a6   : > { %3075 = vmatpush.xpose.msk.msra.mxu1 %vm649_vm1, %v3956_v32  ;;  %3115 = vmatpush.xpose.msk.msrb.mxu3 %vm649_vm1, %v3977_v39  ;;  %v3277_v50 = vunpack.i.l.bf16 %v3276_v8  ;;  %v3278_v57 = vunpack.i.h.bf16 %v3276_v8  ;;  %v3273_v32 = vunpack.i.h.bf16 %v3271_v19 }
 0x1a8   : > { %1470 = vmatpush.msrb.mxu2 %v3277_v50 }
 0x1a9   : > { %3076 = vmatmul.msk.f32.vlgmr.msra.gmra.mxu1 %vm649_vm1, %v3967_v36  ;;  %3116 = vmatmul.msk.f32.vlgmr.msrb.gmra.mxu3 %vm649_vm1, %v4034_v56  ;;  %v4170_v51 = vpop.f32.mrf.mxu3  ;;  %v3267_v56 = vunpack.i.l.bf16 %v4087_v13  ;;  %v3263_v13 = vunpack.i.h.bf16 %v4030_v54  ;;  %v794_v54 = vsel %vm787_vm2, %v4079_v11, -inf }
 0x1aa   : > { %3148 = vmatpush.xpose.msk.msrb.mxu1 %vm649_vm1, %v3980_v40  ;;  %1471 = vmatpush.msrb.mxu2 %v3278_v57  ;;  %v830_v39 = vsel %vm787_vm2, %v4170_v51, -inf  ;;  %v791_v40 = vsel %vm787_vm2, %v4071_v6, -inf }
 0x1ab   : > { %831 = vmax.xlane.f32.xlu2 %v830_v39 }
 0x1ac   : > { %1472 = vmatpush.msrb.mxu2 %v3272_v48 }
 0x1ad   : > { %v4177_v25 = vpop.permute.xlu1 %1575  ;;  %v4179_v36 = vpop.permute.xlu0 %2053  ;;  %792 = vmax.xlane.f32.xlu0 %v791_v40 }
 0x1ae   : > { %3149 = vmatpush.xpose.msk.msrb.mxu1 %vm649_vm1, %v2078_v38  ;;  %1473 = vmatpush.msrb.mxu2 %v3273_v32 }
 0x1b0   : > { %1474 = vmatpush.msrb.mxu2 %v3267_v56 }
 0x1b1   : > { %3077 = vmatmul.msk.f32.gmra.mxu1 %vm649_vm1, %v4001_v47  ;;  %3117 = vmatmul.msk.f32.gmra.mxu3 %vm649_vm1, %v4023_v52  ;;  %v824_v52 = vsel %vm787_vm2, %v4134_v42, -inf }
 0x1b2   : > { %3150 = vmatpush.xpose.msk.msrb.mxu1 %vm649_vm1, %v2076_v21  ;;  %1475 = vmatpush.msrb.mxu2 %v3268_v29 }
 0x1b4   : > { %1476 = vmatpush.msrb.mxu2 %v3262_v31 }
 0x1b5   : > { %v4196_v37 = vpop.permute.xlu1 %1577  ;;  %v4198_v47 = vpop.permute.xlu0 %1099  ;;  %816 = vmax.xlane.f32.xlu0 %v815_v33  ;;  %810 = vmax.xlane.f32.xlu1 %v809_v34 }
 0x1b6   : > { %3151 = vmatpush.xpose.msk.msrb.mxu1 %vm649_vm1, %v4075_v7  ;;  %1477 = vmatpush.msrb.mxu2 %v3263_v13 }
 0x1b9   : > { %3078 = vmatmul.msk.f32.gmra.mxu1 %vm649_vm1, %v4032_v55  ;;  %3118 = vmatmul.msk.f32.gmra.mxu3 %vm649_vm1, %v4025_v53  ;;  %v4218_v55 = vpop.f32.mrf.mxu3  ;;  %v1092_v53 = vpop.permute.xlu2 %1091 }
 0x1ba   : > { %3152 = vmatpush.xpose.msk.msrb.mxu1 %vm649_vm1, %v4050_v61  ;;  %v833_v61 = vsel %vm787_vm2, %v4218_v55, -inf }
 0x1bd   : > { %v4212_v7 = vpop.permute.xlu1 %2051  ;;  %v4214_v21 = vpop.permute.xlu0 %2055  ;;  %825 = vmax.xlane.f32.xlu0 %v824_v52  ;;  %795 = vmax.xlane.f32.xlu1 %v794_v54 }
 0x1be   : > { %3153 = vmatpush.xpose.msk.msrb.mxu1 %vm649_vm1, %v4067_v4  ;;  %v797_v4 = vsel %vm787_vm2, %v4095_v18, -inf }
 0x1c1   : > { %3079 = vmatmul.msk.f32.gmra.mxu1 %vm649_vm1, %v4041_v58  ;;  %3119 = vmatmul.msk.f32.gmra.mxu3 %vm649_vm1, %v4093_v17  ;;  %v4234_v58 = vpop.permute.xlu2 %2047  ;;  %v818_v17 = vsel %vm787_vm2, %v4114_v28, -inf }
 0x1c2   : > { %3154 = vmatpush.xpose.msk.msrb.mxu1 %vm649_vm1, %v4046_v59 }
 0x1c5   : > { %v1580_v38 = vpop.permute.xlu1 %1579  ;;  %v1102_v59 = vpop.permute.xlu0 %1101  ;;  %798 = vmax.xlane.f32.xlu1 %v797_v4  ;;  %834 = vmax.xlane.f32.xlu0 %v833_v61 }
 0x1c6   : > { %3155 = vmatpush.xpose.msk.msrb.mxu1 %vm649_vm1, %v3993_v44 }
 0x1c9   : > { %3080 = vmatmul.msk.f32.gmra.mxu1 %vm649_vm1, %v4065_v3  ;;  %3120 = vmatmul.msk.f32.gmra.mxu3 %vm649_vm1, %v4085_v12  ;;  %v827_v3 = vsel %vm787_vm2, %v4150_v2, -inf  ;;  %v4246_v62 = vpop.permute.xlu2 %2049 }
 0x1cd   : > { %v1104_v46 = vpop.permute.xlu1 %1103  ;;  %v4238_v44 = vpop.permute.xlu0 %1587  ;;  %819 = vmax.xlane.f32.xlu1 %v818_v17 }
 0x1d1   : > { %3081 = vmatmul.msk.f32.gmra.mxu1 %vm649_vm1, %v4099_v20  ;;  %3121 = vmatmul.msk.f32.gmra.mxu3 %vm649_vm1, %v4112_v27  ;;  %v1096_v57 = vpop.permute.xlu2 %1095 }
 0x1d5   : > { %v1106_v12 = vpop.permute.xlu1 %1105  ;;  %v4248_v8 = vpop.permute.xlu0 %1589  ;;  %828 = vmax.xlane.f32.xlu1 %v827_v3 }
 0x1d9   : > { %3082 = vmatmul.msk.f32.gmra.mxu1 %vm649_vm1, %v4130_v41  ;;  %3122 = vmatmul.msk.f32.gmra.mxu3 %vm649_vm1, %v4138_v45  ;;  %v1098_v41 = vpop.permute.xlu2 %1097 }
 0x1dd   : > { %v3281_v50 = vpop.permute.xlu0 %3280  ;;  %v1108_v20 = vpop.permute.xlu1 %1107 }
 0x1de   : > { %v3282_v19 = vunpack.i.l.bf16 %v3281_v50  ;;  %v3283_v27 = vunpack.i.h.bf16 %v3281_v50 }
 0x1e0   : > { %1944 = vmatpush.msrb.mxu0 %v3282_v19 }
 0x1e1   : > { %3083 = vmatmul.msk.f32.gmra.mxu1 %vm649_vm1, %v1092_v53  ;;  %3123 = vmatmul.msk.f32.gmra.mxu3 %vm649_vm1, %v4144_v16  ;;  %v1582_v16 = vpop.permute.xlu2 %1581 }
 0x1e2   : > { %1945 = vmatpush.msrb.mxu0 %v3283_v27 }
 0x1e5   : > { %v3291_v48 = vpop.permute.xlu0 %3290  ;;  %v4257_v32 = vpop.permute.xlu1 %2059 }
 0x1e6   : > { %v3292_v39 = vunpack.i.l.bf16 %v3291_v48  ;;  %v3293_v40 = vunpack.i.h.bf16 %v3291_v48 }
 0x1e8   : > { %1946 = vmatpush.msrb.mxu0 %v3292_v39 }
 0x1e9   : > { %3084 = vmatmul.msk.f32.gmra.mxu1 %vm649_vm1, %v4158_v9  ;;  %3124 = vmatmul.msk.f32.gmra.mxu3 %vm649_vm1, %v4177_v25  ;;  %v1584_v9 = vpop.permute.xlu2 %1583 }
 0x1ea   : > { %1947 = vmatpush.msrb.mxu0 %v3293_v40 }
 0x1ed   : > { %v4263_v45 = vpop.permute.xlu1 %2061 }
 0x1f1   : > { %3085 = vmatmul.msk.f32.gmra.mxu1 %vm649_vm1, %v1096_v57  ;;  %3125 = vmatmul.msk.f32.gmra.mxu3 %vm649_vm1, %v4196_v37  ;;  %v4273_v13 = vpop.permute.xlu2 %2057 }
 0x1f5   : > { %v3286_v56 = vpop.permute.xlu1 %3285 }
 0x1f6   : > { %v3287_v29 = vunpack.i.l.bf16 %v3286_v56  ;;  %v3288_v31 = vunpack.i.h.bf16 %v3286_v56 }
 0x1f8   : > { %2418 = vmatpush.msra.mxu1 %v3287_v29  ;;  %3221 = vmatpush.msra.mxu2 %v3287_v29 }
 0x1f9   : > { %3086 = vmatmul.msk.f32.gmra.mxu1 %vm649_vm1, %v1098_v41  ;;  %3126 = vmatmul.msk.f32.gmra.mxu3 %vm649_vm1, %v1580_v38  ;;  %v1586_v37 = vpop.permute.xlu2 %1585 }
 0x1fa   : > { %2419 = vmatpush.msra.mxu1 %v3288_v31  ;;  %3222 = vmatpush.msra.mxu2 %v3288_v31 }
 0x1fd   : > { %v3296_v25 = vpop.permute.xlu1 %3295 }
 0x1fe   : > { %v3297_v33 = vunpack.i.l.bf16 %v3296_v25  ;;  %v3298_v34 = vunpack.i.h.bf16 %v3296_v25 }
 0x200   : > { %2420 = vmatpush.msra.mxu1 %v3297_v33  ;;  %3223 = vmatpush.msra.mxu2 %v3297_v33 }
 0x201   : > { %3087 = vmatmul.msk.f32.gmra.mxu1 %vm649_vm1, %v4198_v47  ;;  %3127 = vmatmul.msk.f32.gmra.mxu3 %vm649_vm1, %v1582_v16  ;;  %v4289_v17 = vpop.permute.xlu2 %2063 }
 0x202   : > { %2421 = vmatpush.msra.mxu1 %v3298_v34  ;;  %3224 = vmatpush.msra.mxu2 %v3298_v34 }
 0x209   : > { %3088 = vmatmul.msk.f32.gmra.mxu1 %vm649_vm1, %v1102_v59  ;;  %3128 = vmatmul.msk.f32.gmra.mxu3 %vm649_vm1, %v1584_v9  ;;  %v814_v57 = vpop.xlane.xlu2 %813 }
 0x20a   : > { %v844_v39 = vsub.f32 %v4089_v15, %v814_v57 }
 0x210   : > { %v790_v52 = vpop.xlane.xlu0 %789 }
 0x211   : > { %v836_v54 = vsub.f32 %v4060_v1, %v790_v52  ;;  %3089 = vmatmul.msk.f32.gmra.mxu1 %vm649_vm1, %v1104_v46  ;;  %3129 = vmatmul.msk.f32.gmra.mxu3 %vm649_vm1, %v1586_v37 }
 0x213   : > { %v852_v53 = vmul.f32 1.442695, %v836_v54 }
 0x215   : > { %3320 = vpow2.f32 %v852_v53 }
 0x218   : > { %v808_v47 = vpop.xlane.xlu0 %807 }
 0x219   : > { %3090 = vmatmul.msk.f32.gmra.mxu1 %vm649_vm1, %v1106_v12  ;;  %3130 = vmatmul.msk.f32.gmra.mxu3 %vm649_vm1, %v4238_v44 }
 0x21b   : > { %v3321_v61 = vpop.eup %3320 }
 0x21c   : > { %3052 = vmatmul.msk.f32.vlgmr.msra.gmra.mxu0 %vm787_vm2, %v3321_v61  ;;  %v884_v4 = vsel %vm787_vm2, %v3321_v61, 0.0 }
 0x21d   : > { %885 = vadd.xlane.f32.xlu1 %v884_v4 }
 0x220   : > { %v793_v38 = vpop.xlane.xlu0 %792 }
 0x221   : > { %v837_v1 = vsub.f32 %v4071_v6, %v793_v38  ;;  %3091 = vmatmul.msk.f32.gmra.mxu1 %vm649_vm1, %v1108_v20  ;;  %3131 = vmatmul.msk.f32.gmra.mxu3 %vm649_vm1, %v4248_v8  ;;  %v842_v8 = vsub.f32 %v4069_v5, %v808_v47 }
 0x223   : > { %v854_v59 = vmul.f32 1.442695, %v837_v1  ;;  %v864_v27 = vmul.f32 1.442695, %v842_v8 }
 0x225   : > { %3322 = vpow2.f32 %v854_v59 }
 0x226   : > { %v4291_v46 = vpop.f32.mrf.mxu1  ;;  %3324 = vpow2.f32 %v864_v27 }
 0x227   : > { %v1238_v44 = vsel %vm787_vm2, %v4291_v46, -inf }
 0x228   : > { %v811_v3 = vpop.xlane.xlu1 %810  ;;  %1239 = vmax.xlane.f32.xlu0 %v1238_v44 }
 0x229   : > { %3156 = vmatmul.msk.f32.vlgmr.msrb.gmra.mxu1 %vm649_vm1, %v3990_v43  ;;  %v843_v41 = vsub.f32 %v4077_v10, %v811_v3 }
 0x22b   : > { %v3323_v6 = vpop.eup %3322  ;;  %v866_v15 = vmul.f32 1.442695, %v843_v41 }
 0x22c   : > { %3053 = vmatmul.msk.f32.gmra.mxu0 %vm787_vm2, %v3323_v6  ;;  %v4298_v12 = vpop.f32.mrf.mxu3  ;;  %v3325_v31 = vpop.eup %3324  ;;  %v887_v33 = vsel %vm787_vm2, %v3323_v6, 0.0 }
 0x22d   : > { %v1720_v50 = vsel %vm787_vm2, %v4298_v12, -inf }
 0x22e   : > { %v4303_v20 = vpop.f32.mrf.mxu1  ;;  %1721 = vmax.xlane.f32.xlu2 %v1720_v50 }
 0x22f   : > { %v1241_v5 = vsel %vm787_vm2, %v4303_v20, -inf }
 0x230   : > { %v796_v19 = vpop.xlane.xlu1 %795 }
 0x231   : > { %v838_v48 = vsub.f32 %v4079_v11, %v796_v19  ;;  %3157 = vmatmul.msk.f32.gmra.mxu1 %vm649_vm1, %v4058_v0  ;;  %v868_v11 = vmul.f32 1.442695, %v844_v39  ;;  %v802_v0 = vpop.xlane.xlu2 %801 }
 0x232   : > { %v840_v25 = vsub.f32 %v4105_v24, %v802_v0 }
 0x233   : > { %v856_v43 = vmul.f32 1.442695, %v838_v48  ;;  %v817_v48 = vpop.xlane.xlu0 %816 }
 0x234   : > { %v860_v37 = vmul.f32 1.442695, %v840_v25 }
 0x235   : > { %3326 = vpow2.f32 %v856_v43  ;;  %v845_v43 = vsub.f32 %v4101_v22, %v817_v48 }
 0x236   : > { %v4312_v40 = vpop.f32.mrf.mxu1  ;;  %1242 = vmax.xlane.f32.xlu2 %v1241_v5  ;;  %3328 = vpow2.f32 %v868_v11  ;;  %v4378_v11 = vpop.f32.mrf.mxu3 }
 0x237   : > { %v1244_v16 = vsel %vm787_vm2, %v4312_v40, -inf  ;;  %v870_v5 = vmul.f32 1.442695, %v845_v43 }
 0x238   : > { %v799_v56 = vpop.xlane.xlu1 %798  ;;  %1245 = vmax.xlane.f32.xlu0 %v1244_v16 }
 0x239   : > { %v839_v29 = vsub.f32 %v4095_v18, %v799_v56  ;;  %3158 = vmatmul.msk.f32.gmra.mxu1 %vm649_vm1, %v4048_v60  ;;  %v902_v60 = vsel %vm787_vm2, %v3325_v31, 0.0  ;;  %v805_v54 = vpop.xlane.xlu2 %804 }
 0x23a   : > { %v841_v61 = vsub.f32 %v4116_v30, %v805_v54 }
 0x23b   : > { %v858_v9 = vmul.f32 1.442695, %v839_v29  ;;  %v3327_v10 = vpop.eup %3326 }
 0x23c   : > { %3054 = vmatmul.msk.f32.gmra.mxu0 %vm787_vm2, %v3327_v10  ;;  %v3329_v24 = vpop.eup %3328  ;;  %v890_v1 = vsel %vm787_vm2, %v3327_v10, 0.0  ;;  %v862_v59 = vmul.f32 1.442695, %v841_v61 }
 0x23d   : > { %3330 = vpow2.f32 %v858_v9  ;;  %v908_v47 = vsel %vm787_vm2, %v3329_v24, 0.0 }
 0x23e   : > { %3332 = vpow2.f32 %v866_v15  ;;  %v4322_v34 = vpop.f32.mrf.mxu1  ;;  %888 = vadd.xlane.f32.xlu2 %v887_v33 }
 0x23f   : > { %v1247_v18 = vsel %vm787_vm2, %v4322_v34, -inf  ;;  %3334 = vpow2.f32 %v860_v37 }
 0x240   : > { %1248 = vmax.xlane.f32.xlu1 %v1247_v18  ;;  %903 = vadd.xlane.f32.xlu0 %v902_v60  ;;  %3336 = vpow2.f32 %v862_v59  ;;  %v820_v41 = vpop.xlane.xlu1 %819 }
 0x241   : > { %3159 = vmatmul.msk.f32.gmra.mxu1 %vm649_vm1, %v4056_v63  ;;  %3338 = vpow2.f32 %v870_v5 }
 0x243   : > { %v3331_v52 = vpop.eup %3330 }
 0x244   : > { %v3333_v53 = vpop.eup %3332  ;;  %3055 = vmatmul.msk.f32.gmra.mxu0 %vm787_vm2, %v3331_v52  ;;  %v893_v3 = vsel %vm787_vm2, %v3331_v52, 0.0 }
 0x245   : > { %v905_v38 = vsel %vm787_vm2, %v3333_v53, 0.0  ;;  %v3335_v63 = vpop.eup %3334 }
 0x246   : > { %v4332_v4 = vpop.f32.mrf.mxu1  ;;  %909 = vadd.xlane.f32.xlu2 %v908_v47  ;;  %v896_v44 = vsel %vm787_vm2, %v3335_v63, 0.0  ;;  %v3577_v47 = vld [vmem:[#allocation2 + $0x48] sm:$0xff] }
 0x247   : > { %v1250_v6 = vsel %vm787_vm2, %v4332_v4, -inf }
 0x248   : > { %906 = vadd.xlane.f32.xlu1 %v905_v38  ;;  %891 = vadd.xlane.f32.xlu0 %v890_v1  ;;  %v829_v25 = vpop.xlane.xlu1 %828 }
 0x249   : > { %3160 = vmatmul.msk.f32.gmra.mxu1 %vm649_vm1, %v4103_v23  ;;  %v3337_v23 = vpop.eup %3336  ;;  %v849_v60 = vsub.f32 %v4150_v2, %v829_v25 }
 0x24a   : > { %v899_v27 = vsel %vm787_vm2, %v3337_v23, 0.0  ;;  %v4382_v0 = vpop.eup %3338 }
 0x24b   : > { %5318 = vst [vmem:[#allocation3_spill] sm:$0xff] %v4382_v0 }
 0x24c   : > { %3056 = vmatmul.msk.f32.gmra.mxu0 %vm787_vm2, %v3335_v63 }
 0x24e   : > { %v4340_v30 = vpop.f32.mrf.mxu1  ;;  %897 = vadd.xlane.f32.xlu2 %v896_v44 }
 0x24f   : > { %v1253_v50 = vsel %vm787_vm2, %v4340_v30, -inf }
 0x250   : > { %894 = vadd.xlane.f32.xlu1 %v893_v3  ;;  %1251 = vmax.xlane.f32.xlu0 %v1250_v6 }
 0x251   : > { %3161 = vmatmul.msk.f32.gmra.mxu1 %vm649_vm1, %v4110_v26 }
 0x254   : > { %3057 = vmatmul.msk.f32.gmra.mxu0 %vm787_vm2, %v3337_v23 }
 0x256   : > { %v4348_v8 = vpop.f32.mrf.mxu1 }
 0x257   : > { %v1256_v57 = vsel %vm787_vm2, %v4348_v8, -inf }
 0x258   : > { %1254 = vmax.xlane.f32.xlu1 %v1253_v50  ;;  %1257 = vmax.xlane.f32.xlu2 %v1256_v57 }
 0x259   : > { %3162 = vmatmul.msk.f32.gmra.mxu1 %vm649_vm1, %v4142_v49 }
 0x25c   : > { %3058 = vmatmul.msk.f32.gmra.mxu0 %vm787_vm2, %v3325_v31  ;;  %v4393_v31 = vpop.f32.mrf.mxu3 }
 0x25e   : > { %v4357_v19 = vpop.f32.mrf.mxu1 }
 0x25f   : > { %v1259_v26 = vsel %vm787_vm2, %v4357_v19, -inf }
 0x260   : > { %1260 = vmax.xlane.f32.xlu1 %v1259_v26  ;;  %900 = vadd.xlane.f32.xlu2 %v899_v27 }
 0x261   : > { %3163 = vmatmul.msk.f32.gmra.mxu1 %vm649_vm1, %v4234_v58  ;;  %v846_v58 = vsub.f32 %v4114_v28, %v820_v41 }
 0x263   : > { %v872_v56 = vmul.f32 1.442695, %v846_v58 }
 0x264   : > { %3059 = vmatmul.msk.f32.gmra.mxu0 %vm787_vm2, %v3333_v53  ;;  %v4406_v18 = vpop.f32.mrf.mxu3  ;;  %v3576_v53 = vld [vmem:[#allocation2 + $0x40] sm:$0xff] }
 0x265   : > { %3340 = vpow2.f32 %v872_v56  ;;  %v3309_v61 = vpack.i.bf16 %v3576_v53, %v3577_v47 }
 0x266   : > { %v4366_v49 = vpop.f32.mrf.mxu1 }
 0x267   : > { %v1262_v39 = vsel %vm787_vm2, %v4366_v49, -inf }
 0x268   : > { %1263 = vmax.xlane.f32.xlu0 %v1262_v39 }
 0x269   : > { %3164 = vmatmul.msk.f32.gmra.mxu1 %vm649_vm1, %v4246_v62  ;;  %v823_v62 = vpop.xlane.xlu2 %822 }
 0x26a   : > { %v847_v28 = vsub.f32 %v4124_v35, %v823_v62 }
 0x26b   : > { %v4395_v9 = vpop.eup %3340 }
 0x26c   : > { %3060 = vmatmul.msk.f32.gmra.mxu0 %vm787_vm2, %v3329_v24  ;;  %v874_v15 = vmul.f32 1.442695, %v847_v28  ;;  %5319 = vst [vmem:[#allocation4_spill] sm:$0xff] %v4395_v9 }
 0x26e   : > { %v4374_v16 = vpop.f32.mrf.mxu1  ;;  %3342 = vpow2.f32 %v874_v15 }
 0x26f   : > { %v1265_v22 = vsel %vm787_vm2, %v4374_v16, -inf }
 0x270   : > { %1266 = vmax.xlane.f32.xlu2 %v1265_v22 }
 0x271   : > { %3165 = vmatmul.msk.f32.gmra.mxu1 %vm649_vm1, %v4212_v7  ;;  %v826_v7 = vpop.xlane.xlu0 %825  ;;  %v832_v24 = vpop.xlane.xlu2 %831 }
 0x272   : > { %v848_v35 = vsub.f32 %v4134_v42, %v826_v7  ;;  %v850_v2 = vsub.f32 %v4170_v51, %v832_v24 }
 0x274   : > { %3061 = vmatmul.msk.f32.gmra.mxu0 %vm787_vm2, %v4382_v0  ;;  %v4404_v33 = vpop.eup %3342 }
 0x275   : > { %5320 = vst [vmem:[#allocation5_spill] sm:$0xff] %v4404_v33 }
 0x276   : > { %v4387_v29 = vpop.f32.mrf.mxu1 }
 0x279   : > { %3166 = vmatmul.msk.f32.gmra.mxu1 %vm649_vm1, %v4179_v36  ;;  %3305 = vrot.lane.b32.xlu1 %v3872_v14, %s3604_s21  ;;  %v876_v36 = vmul.f32 1.442695, %v848_v35  ;;  %v835_v38 = vpop.xlane.xlu0 %834 }
 0x27a   : > { %v851_v51 = vsub.f32 %v4218_v55, %v835_v38 }
 0x27b   : > { %3344 = vpow2.f32 %v876_v36 }
 0x27c   : > { %3062 = vmatmul.msk.f32.gmra.mxu0 %vm787_vm2, %v4395_v9 }
 0x27e   : > { %v4400_v10 = vpop.f32.mrf.mxu1 }
 0x27f   : > { %v1271_v39 = vsel %vm787_vm2, %v4400_v10, -inf }
 0x281   : > { %3167 = vmatmul.msk.f32.gmra.mxu1 %vm649_vm1, %v4214_v21  ;;  %v878_v21 = vmul.f32 1.442695, %v849_v60  ;;  %v4419_v52 = vpop.eup %3344 }
 0x282   : > { %5321 = vst [vmem:[#allocation6_spill] sm:$0xff] %v4419_v52 }
 0x283   : > { %3346 = vpow2.f32 %v878_v21 }
 0x284   : > { %3063 = vmatmul.msk.f32.gmra.mxu0 %vm787_vm2, %v4404_v33 }
 0x286   : > { %v4411_v37 = vpop.f32.mrf.mxu1 }
 0x287   : > { %v1274_v42 = vsel %vm787_vm2, %v4411_v37, -inf }
 0x288   : > { %3300 = vrot.lane.b32.xlu2 %v3872_v14, %s3603_s20  ;;  %1275 = vmax.xlane.f32.xlu0 %v1274_v42  ;;  %v4426_v14 = vpop.f32.mrf.mxu3 }
 0x289   : > { %3168 = vmatmul.msk.f32.gmra.mxu1 %vm649_vm1, %v4273_v13  ;;  %v880_v13 = vmul.f32 1.442695, %v850_v2  ;;  %v4431_v1 = vpop.eup %3346  ;;  %v1723_v2 = vsel %vm787_vm2, %v4378_v11, -inf }
 0x28a   : > { %5322 = vst [vmem:[#allocation7_spill] sm:$0xff] %v4431_v1 }
 0x28b   : > { %3348 = vpow2.f32 %v880_v13 }
 0x28c   : > { %3064 = vmatmul.msk.f32.gmra.mxu0 %vm787_vm2, %v4419_v52 }
 0x28e   : > { %v4424_v54 = vpop.f32.mrf.mxu1 }
 0x28f   : > { %v1277_v15 = vsel %vm787_vm2, %v4424_v54, -inf }
 0x290   : > { %3310 = vrot.lane.b32.xlu2 %v3309_v61, %s3603_s20  ;;  %v4440_v44 = vpop.f32.mrf.mxu3  ;;  %v4472_v5 = vpop.xlane.xlu1 %885 }
 0x291   : > { %3169 = vmatmul.msk.f32.gmra.mxu1 %vm649_vm1, %v4257_v32  ;;  %v882_v32 = vmul.f32 1.442695, %v851_v51  ;;  %v4444_v6 = vpop.eup %3348 }
 0x292   : > { %5323 = vst [vmem:[#allocation8_spill] sm:$0xff] %v4444_v6 }
 0x293   : > { %3350 = vpow2.f32 %v882_v32 }
 0x294   : > { %3065 = vmatmul.msk.f32.gmra.mxu0 %vm787_vm2, %v4431_v1 }
 0x296   : > { %v4436_v63 = vpop.f32.mrf.mxu1 }
 0x297   : > { %v1280_v59 = vsel %vm787_vm2, %v4436_v63, -inf }
 0x298   : > { %1281 = vmax.xlane.f32.xlu0 %v1280_v59  ;;  %v4457_v26 = vpop.f32.mrf.mxu3 }
 0x299   : > { %3170 = vmatmul.msk.f32.gmra.mxu1 %vm649_vm1, %v4263_v45  ;;  %v1268_v45 = vsel %vm787_vm2, %v4387_v29, -inf }
 0x29b   : > { %v1240_v3 = vpop.xlane.xlu0 %1239 }
 0x29c   : > { %v1286_v23 = vsub.f32 %v4291_v46, %v1240_v3  ;;  %3066 = vmatmul.msk.f32.gmra.mxu0 %vm787_vm2, %v4444_v6  ;;  %v4459_v46 = vpop.eup %3350 }
 0x29d   : > { %5324 = vst [vmem:[#allocation9_spill] sm:$0xff] %v4459_v46 }
 0x29e   : > { %v1302_v55 = vmul.f32 1.442695, %v1286_v23  ;;  %v4449_v50 = vpop.f32.mrf.mxu1 }
 0x29f   : > { %v1283_v51 = vsel %vm787_vm2, %v4449_v50, -inf }
 0x2a0   : > { %3352 = vpow2.f32 %v1302_v55  ;;  %v4475_v22 = vpop.f32.mrf.mxu3 }
 0x2a1   : > { %3171 = vmatmul.msk.f32.gmra.mxu1 %vm649_vm1, %v4289_v17  ;;  %v4453_v57 = vpop.xlane.xlu2 %1721 }
 0x2a3   : > { %1269 = vmax.xlane.f32.xlu1 %v1268_v45 }
 0x2a4   : > { %3067 = vmatmul.msk.f32.gmra.mxu0 %vm787_vm2, %v4459_v46 }
 0x2a6   : > { %v4463_v27 = vpop.eup %3352  ;;  %v4465_v48 = vpop.f32.mrf.mxu1 }
 0x2a7   : > { %3092 = vmatmul.msk.f32.vlgmr.msrb.gmra.mxu2 %vm787_vm2, %v4463_v27  ;;  %v2194_v42 = vsel %vm787_vm2, %v4465_v48, -inf }
 0x2a8   : > { %v4493_v60 = vpop.f32.mrf.mxu3 }
 0x2a9   : > { %v1243_v17 = vpop.xlane.xlu2 %1242 }
 0x2aa   : > { %v1287_v43 = vsub.f32 %v4303_v20, %v1243_v17 }
 0x2ab   : > { %1272 = vmax.xlane.f32.xlu1 %v1271_v39  ;;  %v1246_v41 = vpop.xlane.xlu0 %1245  ;;  %v1741_v39 = vsel %vm787_vm2, %v4475_v22, -inf }
 0x2ac   : > { %v1304_v58 = vmul.f32 1.442695, %v1287_v43  ;;  %3315 = vrot.lane.b32.xlu0 %v3309_v61, %s3604_s21  ;;  %v1288_v56 = vsub.f32 %v4312_v40, %v1246_v41  ;;  %v1729_v43 = vsel %vm787_vm2, %v4406_v18, -inf }
 0x2ae   : > { %3354 = vpow2.f32 %v1304_v58  ;;  %v4478_v62 = vpop.f32.mrf.mxu1  ;;  %v1306_v20 = vmul.f32 1.442695, %v1288_v56 }
 0x2af   : > { %v2197_v13 = vsel %vm787_vm2, %v4478_v62, -inf }
 0x2b0   : > { %3356 = vpow2.f32 %v1306_v20  ;;  %v4513_v38 = vpop.f32.mrf.mxu3 }
 0x2b1   : > { %v4480_v28 = vpop.xlane.xlu2 %888 }
 0x2b3   : > { %1278 = vmax.xlane.f32.xlu1 %v1277_v15  ;;  %v1249_v7 = vpop.xlane.xlu1 %1248  ;;  %v4484_v35 = vpop.xlane.xlu0 %903 }
 0x2b4   : > { %5325 = vst [vmem:[#allocation10_spill] sm:$0xff] %v4484_v35  ;;  %v4486_v36 = vpop.eup %3354  ;;  %v1289_v40 = vsub.f32 %v4322_v34, %v1249_v7 }
 0x2b5   : > { %3093 = vmatmul.msk.f32.gmra.mxu2 %vm787_vm2, %v4486_v36 }
 0x2b6   : > { %v4491_v25 = vpop.f32.mrf.mxu1  ;;  %v1308_v21 = vmul.f32 1.442695, %v1289_v40  ;;  %v4505_v34 = vpop.eup %3356 }
 0x2b8   : > { %3358 = vpow2.f32 %v1308_v21  ;;  %v4532_v41 = vpop.f32.mrf.mxu3  ;;  %v2200_v21 = vsel %vm787_vm2, %v4491_v25, -inf }
 0x2b9   : > { %2195 = vmax.xlane.f32.xlu2 %v2194_v42  ;;  %v4497_v24 = vpop.xlane.xlu2 %909  ;;  %v1732_v42 = vsel %vm787_vm2, %v4426_v14, -inf }
 0x2ba   : > { %5326 = vst [vmem:[#allocation11_spill] sm:$0xff] %v4497_v24 }
 0x2bb   : > { %v4501_v53 = vpop.xlane.xlu1 %906  ;;  %1724 = vmax.xlane.f32.xlu1 %v1723_v2  ;;  %v4503_v47 = vpop.xlane.xlu0 %891 }
 0x2bc   : > { %5327 = vst [vmem:[#allocation12_spill] sm:$0xff] %v4501_v53 }
 0x2bd   : > { %3094 = vmatmul.msk.f32.gmra.mxu2 %vm787_vm2, %v4505_v34 }
 0x2be   : > { %v4509_v61 = vpop.f32.mrf.mxu1  ;;  %v4519_v3 = vpop.eup %3358 }
 0x2c0   : > { %v4546_v2 = vpop.f32.mrf.mxu3 }
 0x2c1   : > { %2198 = vmax.xlane.f32.xlu2 %v2197_v13  ;;  %v4522_v55 = vpop.xlane.xlu2 %897 }
 0x2c2   : > { %5329 = vst [vmem:[#allocation14_spill] sm:$0xff] %v4522_v55 }
 0x2c3   : > { %v4517_v59 = vpop.xlane.xlu1 %894  ;;  %1284 = vmax.xlane.f32.xlu1 %v1283_v51  ;;  %v1252_v32 = vpop.xlane.xlu0 %1251  ;;  %v1726_v51 = vsel %vm787_vm2, %v4393_v31, -inf }
 0x2c4   : > { %5328 = vst [vmem:[#allocation13_spill] sm:$0xff] %v4517_v59  ;;  %v1290_v23 = vsub.f32 %v4332_v4, %v1252_v32 }
 0x2c5   : > { %3095 = vmatmul.msk.f32.gmra.mxu2 %vm787_vm2, %v4519_v3 }
 0x2c6   : > { %v1310_v45 = vmul.f32 1.442695, %v1290_v23  ;;  %v4526_v17 = vpop.f32.mrf.mxu1 }
 0x2c8   : > { %3360 = vpow2.f32 %v1310_v45  ;;  %v1735_v45 = vsel %vm787_vm2, %v4440_v44, -inf }
 0x2c9   : > { %1730 = vmax.xlane.f32.xlu2 %v1729_v43  ;;  %v2203_v43 = vsel %vm787_vm2, %v4509_v61, -inf }
 0x2cb   : > { %v1255_v58 = vpop.xlane.xlu1 %1254  ;;  %1742 = vmax.xlane.f32.xlu1 %v1741_v39  ;;  %v1258_v56 = vpop.xlane.xlu2 %1257 }
 0x2cc   : > { %v1291_v4 = vsub.f32 %v4340_v30, %v1255_v58  ;;  %v1292_v40 = vsub.f32 %v4348_v8, %v1258_v56 }
 0x2ce   : > { %v4535_v20 = vpop.eup %3360  ;;  %v1312_v15 = vmul.f32 1.442695, %v1291_v4  ;;  %v4537_v7 = vpop.f32.mrf.mxu1  ;;  %v1314_v30 = vmul.f32 1.442695, %v1292_v40  ;;  %v1744_v4 = vsel %vm787_vm2, %v4493_v60, -inf }
 0x2cf   : > { %3096 = vmatmul.msk.f32.gmra.mxu2 %vm787_vm2, %v4535_v20 }
 0x2d0   : > { %3362 = vpow2.f32 %v1312_v15 }
 0x2d1   : > { %1733 = vmax.xlane.f32.xlu2 %v1732_v42  ;;  %3364 = vpow2.f32 %v1314_v30  ;;  %v1738_v42 = vsel %vm787_vm2, %v4457_v26, -inf  ;;  %v2206_v30 = vsel %vm787_vm2, %v4526_v17, -inf }
 0x2d3   : > { %2201 = vmax.xlane.f32.xlu1 %v2200_v21  ;;  %v1261_v13 = vpop.xlane.xlu1 %1260  ;;  %v4561_v39 = vpop.xlane.xlu2 %900 }
 0x2d4   : > { %v1293_v8 = vsub.f32 %v4357_v19, %v1261_v13  ;;  %5330 = vst [vmem:[#allocation15_spill] sm:$0xff] %v4561_v39  ;;  %v4569_v19 = vpop.f32.mrf.mxu3 }
 0x2d6   : > { %v4550_v32 = vpop.eup %3362  ;;  %v4552_v23 = vpop.f32.mrf.mxu1  ;;  %1727 = vmax.xlane.f32.xlu0 %v1726_v51  ;;  %v1316_v58 = vmul.f32 1.442695, %v1293_v8 }
 0x2d7   : > { %3097 = vmatmul.msk.f32.gmra.mxu2 %vm787_vm2, %v4550_v32  ;;  %v4565_v56 = vpop.eup %3364 }
 0x2d8   : > { %3366 = vpow2.f32 %v1316_v58 }
 0x2d9   : > { %1736 = vmax.xlane.f32.xlu2 %v1735_v45 }
 0x2db   : > { %2204 = vmax.xlane.f32.xlu1 %v2203_v43  ;;  %v1264_v15 = vpop.xlane.xlu0 %1263 }
 0x2dc   : > { %v1294_v21 = vsub.f32 %v4366_v49, %v1264_v15  ;;  %v1747_v49 = vsel %vm787_vm2, %v4513_v38, -inf  ;;  %v4588_v58 = vpop.f32.mrf.mxu3  ;;  %v1768_v15 = vsub.f32 %v4298_v12, %v4453_v57  ;;  %v1756_v57 = vsel %vm787_vm2, %v4569_v19, -inf }
 0x2de   : > { %v4567_v40 = vpop.f32.mrf.mxu1  ;;  %1745 = vmax.xlane.f32.xlu0 %v1744_v4  ;;  %v1318_v51 = vmul.f32 1.442695, %v1294_v21  ;;  %v4580_v45 = vpop.eup %3366  ;;  %v1784_v52 = vmul.f32 1.442695, %v1768_v15 }
 0x2df   : > { %3098 = vmatmul.msk.f32.gmra.mxu2 %vm787_vm2, %v4565_v56  ;;  %v2215_v8 = vsel %vm787_vm2, %v4567_v40, -inf }
 0x2e0   : > { %3368 = vpow2.f32 %v1318_v51 }
 0x2e1   : > { %1739 = vmax.xlane.f32.xlu2 %v1738_v42  ;;  %v2209_v42 = vsel %vm787_vm2, %v4537_v7, -inf }
 0x2e3   : > { %v1267_v13 = vpop.xlane.xlu2 %1266  ;;  %2207 = vmax.xlane.f32.xlu1 %v2206_v30 }
 0x2e4   : > { %v1295_v4 = vsub.f32 %v4374_v16, %v1267_v13  ;;  %v1753_v16 = vsel %vm787_vm2, %v4546_v2, -inf  ;;  %v4607_v51 = vpop.f32.mrf.mxu3 }
 0x2e6   : > { %v4582_v43 = vpop.f32.mrf.mxu1  ;;  %2216 = vmax.xlane.f32.xlu0 %v2215_v8  ;;  %v1320_v6 = vmul.f32 1.442695, %v1295_v4  ;;  %v4599_v13 = vpop.eup %3368 }
 0x2e7   : > { %3099 = vmatmul.msk.f32.gmra.mxu2 %vm787_vm2, %v4580_v45 }
 0x2e8   : > { %3370 = vpow2.f32 %v1320_v6  ;;  %v1762_v6 = vsel %vm787_vm2, %v4607_v51, -inf }
 0x2e9   : > { %1748 = vmax.xlane.f32.xlu2 %v1747_v49  ;;  %3372 = vpow2.f32 %v1784_v52 }
 0x2eb   : > { %v3306_v21 = vpop.permute.xlu1 %3305  ;;  %v3301_v30 = vpop.permute.xlu2 %3300  ;;  %2210 = vmax.xlane.f32.xlu1 %v2209_v42 }
 0x2ec   : > { %v3307_v8 = vunpack.i.l.bf16 %v3306_v21  ;;  %v3302_v46 = vunpack.i.l.bf16 %v3301_v30  ;;  %v3303_v24 = vunpack.i.h.bf16 %v3301_v30  ;;  %v3308_v12 = vunpack.i.h.bf16 %v3306_v21  ;;  %v4617_v21 = vpop.f32.mrf.mxu0 }
 0x2ed   : > { %v2218_v30 = vsel %vm787_vm2, %v4582_v43, -inf }
 0x2ee   : > { %1948 = vmatpush.msrb.mxu0 %v3302_v46  ;;  %v4595_v1 = vpop.f32.mrf.mxu1  ;;  %2422 = vmatpush.msra.mxu1 %v3307_v8  ;;  %v2212_v46 = vsel %vm787_vm2, %v4552_v23, -inf }
 0x2ef   : > { %3225 = vmatpush.msra.mxu2 %v3307_v8  ;;  %1754 = vmax.xlane.f32.xlu0 %v1753_v16  ;;  %v1750_v8 = vsel %vm787_vm2, %v4532_v41, -inf  ;;  %v4624_v16 = vpop.f32.mrf.mxu3 }
 0x2f0   : > { %3100 = vmatmul.msk.f32.gmra.mxu2 %vm787_vm2, %v4599_v13  ;;  %1949 = vmatpush.msrb.mxu0 %v3303_v24  ;;  %v4613_v24 = vpop.eup %3370 }
 0x2f1   : > { %2423 = vmatpush.msra.mxu1 %v3308_v12  ;;  %3226 = vmatpush.msra.mxu2 %v3308_v12  ;;  %v3373_v52 = vpop.eup %3372 }
 0x2f2   : > { %1757 = vmax.xlane.f32.xlu2 %v1756_v57 }
 0x2f3   : > { %v3311_v49 = vpop.permute.xlu2 %3310  ;;  %2213 = vmax.xlane.f32.xlu1 %v2212_v46 }
 0x2f4   : > { %v3312_v4 = vunpack.i.l.bf16 %v3311_v49  ;;  %v3313_v15 = vunpack.i.h.bf16 %v3311_v49  ;;  %v4630_v46 = vpop.f32.mrf.mxu0  ;;  %v1765_v49 = vsel %vm787_vm2, %v4624_v16, -inf }
 0x2f6   : > { %1950 = vmatpush.msrb.mxu0 %v3312_v4  ;;  %v4609_v42 = vpop.f32.mrf.mxu1  ;;  %v1759_v4 = vsel %vm787_vm2, %v4588_v58, -inf }
 0x2f7   : > { %1763 = vmax.xlane.f32.xlu0 %v1762_v6  ;;  %v2224_v57 = vsel %vm787_vm2, %v4609_v42, -inf  ;;  %v1334_v6 = vsel %vm787_vm2, %v4463_v27, 0.0  ;;  %v1816_v27 = vsel %vm787_vm2, %v3373_v52, 0.0 }
 0x2f8   : > { %3101 = vmatmul.msk.f32.gmra.mxu2 %vm787_vm2, %v4613_v24  ;;  %1951 = vmatpush.msrb.mxu0 %v3313_v15 }
 0x2f9   : > { %3132 = vmatmul.msk.f32.vlgmr.msrb.gmra.mxu0 %vm787_vm2, %v3373_v52 }
 0x2fa   : > { %2219 = vmax.xlane.f32.xlu2 %v2218_v30 }
 0x2fb   : > { %1751 = vmax.xlane.f32.xlu1 %v1750_v8  ;;  %v1276_v33 = vpop.xlane.xlu0 %1275 }
 0x2fc   : > { %v4640_v30 = vpop.f32.mrf.mxu0 }
 0x2fe   : > { %v4626_v12 = vpop.f32.mrf.mxu1 }
 0x2ff   : > { %2225 = vmax.xlane.f32.xlu0 %v2224_v57  ;;  %v2227_v8 = vsel %vm787_vm2, %v4626_v12, -inf  ;;  %v2221_v57 = vsel %vm787_vm2, %v4595_v1, -inf }
 0x302   : > { %1766 = vmax.xlane.f32.xlu2 %v1765_v49 }
 0x303   : > { %1760 = vmax.xlane.f32.xlu1 %v1759_v4  ;;  %v1337_v4 = vsel %vm787_vm2, %v4486_v36, 0.0 }
 0x306   : > { %v4636_v15 = vpop.f32.mrf.mxu1 }
 0x307   : > { %1335 = vadd.xlane.f32.xlu0 %v1334_v6  ;;  %v4651_v6 = vpop.f32.mrf.mxu0 }
 0x308   : > { %5331 = vst [vmem:[#allocation16_spill] sm:$0xff] %v4651_v6 }
 0x30a   : > { %2228 = vmax.xlane.f32.xlu2 %v2227_v8 }
 0x30b   : > { %2222 = vmax.xlane.f32.xlu1 %v2221_v57  ;;  %v1282_v35 = vpop.xlane.xlu0 %1281 }
 0x30e   : > { %v4646_v49 = vpop.f32.mrf.mxu1 }
 0x30f   : > { %1338 = vadd.xlane.f32.xlu0 %v1337_v4  ;;  %v2233_v8 = vsel %vm787_vm2, %v4646_v49, -inf  ;;  %v4660_v52 = vpop.f32.mrf.mxu0 }
 0x313   : > { %1817 = vadd.xlane.f32.xlu1 %v1816_v27  ;;  %v1340_v27 = vsel %vm787_vm2, %v4505_v34, 0.0 }
 0x316   : > { %v4653_v53 = vpop.f32.mrf.mxu1  ;;  %v1270_v9 = vpop.xlane.xlu1 %1269 }
 0x317   : > { %v1296_v57 = vsub.f32 %v4387_v29, %v1270_v9  ;;  %2234 = vmax.xlane.f32.xlu0 %v2233_v8  ;;  %v2236_v36 = vsel %vm787_vm2, %v4653_v53, -inf  ;;  %v1298_v8 = vsub.f32 %v4411_v37, %v1276_v33 }
 0x318   : > { %2237 = vmax.xlane.f32.xlu2 %v2236_v36  ;;  %v1346_v36 = vsel %vm787_vm2, %v4535_v20, 0.0 }
 0x319   : > { %v1322_v4 = vmul.f32 1.442695, %v1296_v57  ;;  %v1326_v57 = vmul.f32 1.442695, %v1298_v8 }
 0x31b   : > { %3374 = vpow2.f32 %v1322_v4 }
 0x31e   : > { %v1273_v39 = vpop.xlane.xlu1 %1272  ;;  %v3316_v55 = vpop.permute.xlu0 %3315 }
 0x31f   : > { %v1297_v0 = vsub.f32 %v4400_v10, %v1273_v39  ;;  %1341 = vadd.xlane.f32.xlu0 %v1340_v27  ;;  %v3317_v6 = vunpack.i.l.bf16 %v3316_v55  ;;  %v3318_v9 = vunpack.i.h.bf16 %v3316_v55  ;;  %v1343_v10 = vsel %vm787_vm2, %v4519_v3, 0.0  ;;  %v4672_v39 = vpop.f32.mrf.mxu0 }
 0x321   : > { %v4665_v59 = vpop.eup %3374  ;;  %v1324_v29 = vmul.f32 1.442695, %v1297_v0  ;;  %2424 = vmatpush.msra.mxu1 %v3317_v6  ;;  %3227 = vmatpush.msra.mxu2 %v3317_v6 }
 0x322   : > { %3102 = vmatmul.msk.f32.gmra.mxu2 %vm787_vm2, %v4665_v59 }
 0x323   : > { %3376 = vpow2.f32 %v1324_v29  ;;  %2425 = vmatpush.msra.mxu1 %v3318_v9  ;;  %3228 = vmatpush.msra.mxu2 %v3318_v9 }
 0x324   : > { %3378 = vpow2.f32 %v1326_v57 }
 0x326   : > { %v1279_v34 = vpop.xlane.xlu1 %1278 }
 0x327   : > { %1344 = vadd.xlane.f32.xlu0 %v1343_v10  ;;  %v1299_v55 = vsub.f32 %v4424_v54, %v1279_v34  ;;  %v4683_v29 = vpop.f32.mrf.mxu0  ;;  %v1300_v54 = vsub.f32 %v4436_v63, %v1282_v35 }
 0x329   : > { %v4674_v0 = vpop.eup %3376  ;;  %v1328_v27 = vmul.f32 1.442695, %v1299_v55  ;;  %v1330_v55 = vmul.f32 1.442695, %v1300_v54  ;;  %v2230_v54 = vsel %vm787_vm2, %v4636_v15, -inf }
 0x32a   : > { %3103 = vmatmul.msk.f32.gmra.mxu2 %vm787_vm2, %v4674_v0  ;;  %v4685_v8 = vpop.eup %3378 }
 0x32c   : > { %v2196_v6 = vpop.xlane.xlu2 %2195 }
 0x32d   : > { %v2242_v33 = vsub.f32 %v4465_v48, %v2196_v6 }
 0x32e   : > { %v1725_v37 = vpop.xlane.xlu1 %1724 }
 0x32f   : > { %v2258_v3 = vmul.f32 1.442695, %v2242_v33  ;;  %v1769_v4 = vsub.f32 %v4378_v11, %v1725_v37  ;;  %1347 = vadd.xlane.f32.xlu0 %v1346_v36  ;;  %v1349_v11 = vsel %vm787_vm2, %v4550_v32, 0.0  ;;  %v4699_v35 = vpop.f32.mrf.mxu0 }
 0x331   : > { %3380 = vpow2.f32 %v2258_v3  ;;  %v1786_v9 = vmul.f32 1.442695, %v1769_v4  ;;  %v1352_v3 = vsel %vm787_vm2, %v4565_v56, 0.0 }
 0x332   : > { %3104 = vmatmul.msk.f32.gmra.mxu2 %vm787_vm2, %v4685_v8 }
 0x333   : > { %3382 = vpow2.f32 %v1786_v9 }
 0x334   : > { %3384 = vpow2.f32 %v1328_v27  ;;  %v2199_v48 = vpop.xlane.xlu2 %2198 }
 0x335   : > { %v2243_v20 = vsub.f32 %v4478_v62, %v2199_v48 }
 0x336   : > { %v1285_v34 = vpop.xlane.xlu1 %1284 }
 0x337   : > { %v3381_v10 = vpop.eup %3380  ;;  %v2260_v57 = vmul.f32 1.442695, %v2243_v20  ;;  %1350 = vadd.xlane.f32.xlu0 %v1349_v11  ;;  %v1301_v32 = vsub.f32 %v4449_v50, %v1285_v34  ;;  %v4718_v48 = vpop.f32.mrf.mxu0 }
 0x338   : > { %3172 = vmatmul.msk.f32.vlgmr.msra.gmra.mxu1 %vm787_vm2, %v3381_v10  ;;  %v2290_v6 = vsel %vm787_vm2, %v3381_v10, 0.0 }
 0x339   : > { %v3383_v33 = vpop.eup %3382  ;;  %3386 = vpow2.f32 %v2260_v57  ;;  %2291 = vadd.xlane.f32.xlu2 %v2290_v6  ;;  %v1332_v27 = vmul.f32 1.442695, %v1301_v32 }
 0x33a   : > { %v4695_v63 = vpop.eup %3384  ;;  %3133 = vmatmul.msk.f32.gmra.mxu0 %vm787_vm2, %v3383_v33  ;;  %v1819_v62 = vsel %vm787_vm2, %v3383_v33, 0.0  ;;  %3388 = vpow2.f32 %v1330_v55 }
 0x33b   : > { %3105 = vmatmul.msk.f32.gmra.mxu2 %vm787_vm2, %v4695_v63  ;;  %1820 = vadd.xlane.f32.xlu1 %v1819_v62  ;;  %3390 = vpow2.f32 %v1332_v27 }
 0x33c   : > { %v1731_v37 = vpop.xlane.xlu2 %1730 }
 0x33d   : > { %v1771_v55 = vsub.f32 %v4406_v18, %v1731_v37 }
 0x33e   : > { %v4704_v36 = vpop.xlane.xlu1 %1742 }
 0x33f   : > { %v4708_v4 = vpop.eup %3386  ;;  %1353 = vadd.xlane.f32.xlu0 %v1352_v3  ;;  %v4727_v32 = vpop.f32.mrf.mxu0  ;;  %v1790_v3 = vmul.f32 1.442695, %v1771_v55 }
 0x340   : > { %3173 = vmatmul.msk.f32.gmra.mxu1 %vm787_vm2, %v4708_v4  ;;  %v4712_v9 = vpop.eup %3388  ;;  %5332 = vst [vmem:[#allocation17_spill] sm:$0xff] %v4727_v32 }
 0x341   : > { %v4721_v10 = vpop.eup %3390 }
 0x343   : > { %3106 = vmatmul.msk.f32.gmra.mxu2 %vm787_vm2, %v4712_v9  ;;  %2231 = vmax.xlane.f32.xlu1 %v2230_v54 }
 0x344   : > { %v1734_v50 = vpop.xlane.xlu2 %1733 }
 0x346   : > { %v2202_v56 = vpop.xlane.xlu1 %2201 }
 0x347   : > { %v2244_v20 = vsub.f32 %v4491_v25, %v2202_v56 }
 0x349   : > { %v2262_v34 = vmul.f32 1.442695, %v2244_v20  ;;  %v1728_v11 = vpop.xlane.xlu0 %1727  ;;  %v1772_v20 = vsub.f32 %v4426_v14, %v1734_v50 }
 0x34a   : > { %v1770_v57 = vsub.f32 %v4393_v31, %v1728_v11 }
 0x34b   : > { %3392 = vpow2.f32 %v2262_v34  ;;  %3107 = vmatmul.msk.f32.gmra.mxu2 %vm787_vm2, %v4721_v10 }
 0x34c   : > { %v1788_v6 = vmul.f32 1.442695, %v1770_v57  ;;  %v1737_v33 = vpop.xlane.xlu2 %1736  ;;  %v4742_v57 = vpop.f32.mrf.mxu0 }
 0x34d   : > { %5333 = vst [vmem:[#allocation18_spill] sm:$0xff] %v4742_v57 }
 0x34e   : > { %3394 = vpow2.f32 %v1788_v6  ;;  %v2205_v62 = vpop.xlane.xlu1 %2204 }
 0x34f   : > { %v2245_v25 = vsub.f32 %v4509_v61, %v2205_v62 }
 0x351   : > { %v4730_v27 = vpop.eup %3392  ;;  %v2264_v54 = vmul.f32 1.442695, %v2245_v25  ;;  %v4732_v56 = vpop.xlane.xlu0 %1745  ;;  %v1792_v25 = vmul.f32 1.442695, %v1772_v20 }
 0x352   : > { %3174 = vmatmul.msk.f32.gmra.mxu1 %vm787_vm2, %v4730_v27  ;;  %v4754_v20 = vpop.f32.mrf.mxu1 }
 0x353   : > { %3396 = vpow2.f32 %v2264_v54 }
 0x354   : > { %v3395_v31 = vpop.eup %3394  ;;  %3398 = vpow2.f32 %v1790_v3  ;;  %v1740_v18 = vpop.xlane.xlu2 %1739 }
 0x355   : > { %3134 = vmatmul.msk.f32.gmra.mxu0 %vm787_vm2, %v3395_v31  ;;  %v1822_v37 = vsel %vm787_vm2, %v3395_v31, 0.0 }
 0x356   : > { %v2208_v61 = vpop.xlane.xlu1 %2207  ;;  %1823 = vadd.xlane.f32.xlu1 %v1822_v37 }
 0x357   : > { %v2246_v34 = vsub.f32 %v4526_v17, %v2208_v61  ;;  %v1773_v17 = vsub.f32 %v4440_v44, %v1737_v33  ;;  %v2239_v44 = vsel %vm787_vm2, %v4754_v20, -inf }
 0x359   : > { %v4740_v11 = vpop.eup %3396  ;;  %v2266_v55 = vmul.f32 1.442695, %v2246_v34  ;;  %v2217_v6 = vpop.xlane.xlu0 %2216  ;;  %v1794_v61 = vmul.f32 1.442695, %v1773_v17 }
 0x35a   : > { %v3399_v62 = vpop.eup %3398  ;;  %3175 = vmatmul.msk.f32.vlgmr.msra.gmra.mxu2 %vm787_vm2, %v4740_v11 }
 0x35b   : > { %3400 = vpow2.f32 %v2266_v55  ;;  %v1825_v14 = vsel %vm787_vm2, %v3399_v62, 0.0  ;;  %v4760_v55 = vpop.f32.mrf.mxu0 }
 0x35c   : > { %v4746_v3 = vpop.xlane.xlu2 %1748  ;;  %3402 = vpow2.f32 %v1792_v25  ;;  %5334 = vst [vmem:[#allocation19_spill] sm:$0xff] %v4760_v55  ;;  %v2249_v55 = vsub.f32 %v4567_v40, %v2217_v6 }
 0x35d   : > { %3135 = vmatmul.msk.f32.gmra.mxu0 %vm787_vm2, %v3399_v62 }
 0x35e   : > { %v2211_v50 = vpop.xlane.xlu1 %2210  ;;  %1826 = vadd.xlane.f32.xlu1 %v1825_v14 }
 0x35f   : > { %v2247_v54 = vsub.f32 %v4537_v7, %v2211_v50  ;;  %v1774_v7 = vsub.f32 %v4457_v26, %v1740_v18 }
 0x361   : > { %v4752_v31 = vpop.eup %3400  ;;  %v2268_v37 = vmul.f32 1.442695, %v2247_v54  ;;  %v1796_v54 = vmul.f32 1.442695, %v1774_v7  ;;  %v2272_v7 = vmul.f32 1.442695, %v2249_v55 }
 0x362   : > { %v4756_v34 = vpop.xlane.xlu0 %1754  ;;  %3176 = vmatmul.msk.f32.gmra.mxu2 %vm787_vm2, %v4752_v31  ;;  %v3403_v62 = vpop.eup %3402 }
 0x363   : > { %3404 = vpow2.f32 %v2268_v37  ;;  %v4776_v26 = vpop.f32.mrf.mxu0  ;;  %v1828_v18 = vsel %vm787_vm2, %v3403_v62, 0.0 }
 0x364   : > { %3406 = vpow2.f32 %v1794_v61  ;;  %5335 = vst [vmem:[#allocation20_spill] sm:$0xff] %v4776_v26 }
 0x365   : > { %3136 = vmatmul.msk.f32.gmra.mxu0 %vm787_vm2, %v3403_v62  ;;  %v4766_v33 = vpop.xlane.xlu2 %1757 }
 0x366   : > { %v2214_v25 = vpop.xlane.xlu1 %2213  ;;  %2240 = vmax.xlane.f32.xlu1 %v2239_v44 }
 0x367   : > { %v2248_v14 = vsub.f32 %v4552_v23, %v2214_v25  ;;  %v1775_v23 = vsub.f32 %v4475_v22, %v4704_v36  ;;  %v1776_v36 = vsub.f32 %v4493_v60, %v4732_v56  ;;  %v1777_v56 = vsub.f32 %v4513_v38, %v4746_v3 }
 0x369   : > { %v4769_v17 = vpop.eup %3404  ;;  %v2270_v50 = vmul.f32 1.442695, %v2248_v14  ;;  %v1798_v57 = vmul.f32 1.442695, %v1775_v23  ;;  %v1800_v23 = vmul.f32 1.442695, %v1776_v36 }
 0x36a   : > { %v4771_v37 = vpop.xlane.xlu0 %1763  ;;  %3177 = vmatmul.msk.f32.gmra.mxu2 %vm787_vm2, %v4769_v17  ;;  %v3407_v61 = vpop.eup %3406 }
 0x36b   : > { %3408 = vpow2.f32 %v2270_v50  ;;  %v1831_v22 = vsel %vm787_vm2, %v3407_v61, 0.0  ;;  %v4793_v62 = vpop.f32.mrf.mxu0 }
 0x36c   : > { %3410 = vpow2.f32 %v1796_v54  ;;  %5336 = vst [vmem:[#allocation21_spill] sm:$0xff] %v4793_v62  ;;  %v1802_v62 = vmul.f32 1.442695, %v1777_v56 }
 0x36d   : > { %3137 = vmatmul.msk.f32.gmra.mxu0 %vm787_vm2, %v3407_v61  ;;  %v2220_v25 = vpop.xlane.xlu2 %2219  ;;  %3412 = vpow2.f32 %v2272_v7 }
 0x36e   : > { %v1752_v44 = vpop.xlane.xlu1 %1751  ;;  %1829 = vadd.xlane.f32.xlu1 %v1828_v18  ;;  %v2250_v6 = vsub.f32 %v4582_v43, %v2220_v25  ;;  %3414 = vpow2.f32 %v1798_v57 }
 0x370   : > { %v2274_v54 = vmul.f32 1.442695, %v2250_v6 }
 0x371   : > { %v4782_v14 = vpop.eup %3408 }
 0x372   : > { %v2226_v40 = vpop.xlane.xlu0 %2225  ;;  %3178 = vmatmul.msk.f32.gmra.mxu2 %vm787_vm2, %v4782_v14  ;;  %v3411_v50 = vpop.eup %3410  ;;  %3416 = vpow2.f32 %v2274_v54 }
 0x373   : > { %v4795_v18 = vpop.eup %3412  ;;  %v1834_v60 = vsel %vm787_vm2, %v3411_v50, 0.0  ;;  %v2252_v38 = vsub.f32 %v4609_v42, %v2226_v40 }
 0x374   : > { %v4799_v43 = vpop.eup %3414 }
 0x375   : > { %3138 = vmatmul.msk.f32.gmra.mxu0 %vm787_vm2, %v3411_v50  ;;  %v4806_v57 = vpop.xlane.xlu2 %1766 }
 0x376   : > { %v4791_v55 = vpop.xlane.xlu1 %1760  ;;  %1832 = vadd.xlane.f32.xlu1 %v1831_v22  ;;  %v4811_v22 = vpop.f32.mrf.mxu0 }
 0x377   : > { %5337 = vst [vmem:[#allocation22_spill] sm:$0xff] %v4811_v22 }
 0x378   : > { %v4809_v6 = vpop.eup %3416 }
 0x37a   : > { %v1336_v7 = vpop.xlane.xlu0 %1335  ;;  %3179 = vmatmul.msk.f32.gmra.mxu2 %vm787_vm2, %v4795_v18 }
 0x37b   : > { %3418 = vrcp.f32 %v1336_v7  ;;  %v1479_v7 = vpop.f32.mrf.mxu2 }
 0x37c   : > { %3420 = vpow2.f32 %v1800_v23  ;;  %v2278_v23 = vmul.f32 1.442695, %v2252_v38 }
 0x37d   : > { %3139 = vmatmul.msk.f32.gmra.mxu0 %vm787_vm2, %v4799_v43 }
 0x37e   : > { %v2223_v61 = vpop.xlane.xlu1 %2222  ;;  %1835 = vadd.xlane.f32.xlu1 %v1834_v60  ;;  %v2229_v60 = vpop.xlane.xlu2 %2228 }
 0x37f   : > { %v2251_v25 = vsub.f32 %v4595_v1, %v2223_v61  ;;  %v1778_v1 = vsub.f32 %v4532_v41, %v1752_v44  ;;  %v1779_v41 = vsub.f32 %v4546_v2, %v4756_v34  ;;  %v1780_v2 = vsub.f32 %v4569_v19, %v4766_v33 }
 0x380   : > { %v1782_v33 = vsub.f32 %v4607_v51, %v4771_v37  ;;  %v2296_v51 = vsel %vm787_vm2, %v4730_v27, 0.0  ;;  %v2308_v37 = vsel %vm787_vm2, %v4782_v14, 0.0  ;;  %v2299_v27 = vsel %vm787_vm2, %v4740_v11, 0.0 }
 0x381   : > { %v2276_v36 = vmul.f32 1.442695, %v2251_v25  ;;  %v3419_v54 = vpop.eup %3418  ;;  %v1804_v25 = vmul.f32 1.442695, %v1778_v1  ;;  %v2311_v14 = vsel %vm787_vm2, %v4795_v18, 0.0  ;;  %v2302_v18 = vsel %vm787_vm2, %v4752_v31, 0.0 }
 0x382   : > { %v1339_v26 = vpop.xlane.xlu0 %1338  ;;  %3180 = vmatmul.msk.f32.gmra.mxu2 %vm787_vm2, %v4809_v6  ;;  %v1543_v3 = vmul.f32 %v3419_v54, %v1479_v7  ;;  %v4816_v50 = vpop.eup %3420 }
 0x383   : > { %3422 = vpow2.f32 %v2276_v36  ;;  %v1482_v40 = vpop.f32.mrf.mxu2 }
 0x384   : > { %3424 = vrcp.f32 %v1339_v26  ;;  %2523 = vrot.lane.b32.xlu2 %v1543_v3, %s3605_s22  ;;  %v2253_v26 = vsub.f32 %v4626_v12, %v2229_v60  ;;  %v1806_v12 = vmul.f32 1.442695, %v1779_v41  ;;  %v1808_v60 = vmul.f32 1.442695, %v1780_v2 }
 0x385   : > { %3140 = vmatmul.msk.f32.gmra.mxu0 %vm787_vm2, %v4816_v50  ;;  %3426 = vpow2.f32 %v1802_v62  ;;  %v4829_v62 = vpop.f32.mrf.mxu0 }
 0x386   : > { %v1818_v61 = vpop.xlane.xlu1 %1817  ;;  %3428 = vpow2.f32 %v2278_v23  ;;  %5338 = vst [vmem:[#allocation23_spill] sm:$0xff] %v4829_v62  ;;  %v2280_v44 = vmul.f32 1.442695, %v2253_v26 }
 0x387   : > { %3430 = vrcp.f32 %v1818_v61 }
 0x388   : > { %3432 = vpow2.f32 %v1804_v25  ;;  %v1812_v25 = vmul.f32 1.442695, %v1782_v33 }
 0x389   : > { %v4822_v56 = vpop.eup %3422  ;;  %3434 = vpow2.f32 %v2280_v44 }
 0x38a   : > { %v3425_v42 = vpop.eup %3424  ;;  %3181 = vmatmul.msk.f32.gmra.mxu2 %vm787_vm2, %v4822_v56  ;;  %3436 = vpow2.f32 %v1806_v12 }
 0x38b   : > { %v1544_v36 = vmul.f32 %v3425_v42, %v1482_v40  ;;  %v4827_v54 = vpop.eup %3426  ;;  %3438 = vpow2.f32 %v1808_v60  ;;  %v1781_v42 = vsub.f32 %v4588_v58, %v4791_v55  ;;  %v1783_v58 = vsub.f32 %v4624_v16, %v4806_v57  ;;  %v2235_v57 = vpop.xlane.xlu0 %2234 }
 0x38c   : > { %v4836_v7 = vpop.eup %3428  ;;  %v2238_v60 = vpop.xlane.xlu2 %2237 }
 0x38d   : > { %2525 = vrot.lane.b32.xlu0 %v1544_v36, %s3605_s22  ;;  %3141 = vmatmul.msk.f32.gmra.mxu0 %vm787_vm2, %v4827_v54  ;;  %v3431_v38 = vpop.eup %3430  ;;  %v1953_v1 = vpop.f32.mrf.mxu0  ;;  %v1810_v40 = vmul.f32 1.442695, %v1781_v42  ;;  %v2293_v36 = vsel %vm787_vm2, %v4708_v4, 0.0  ;;  %v1814_v41 = vmul.f32 1.442695, %v1783_v58  ;;  %v2256_v11 = vsub.f32 %v4653_v53, %v2238_v60 }
 0x38e   : > { %v4840_v3 = vpop.eup %3432  ;;  %v2017_v23 = vmul.f32 %v3431_v38, %v1953_v1  ;;  %v1485_v4 = vpop.f32.mrf.mxu2  ;;  %v2255_v1 = vsub.f32 %v4646_v49, %v2235_v57  ;;  %v1837_v49 = vsel %vm787_vm2, %v4799_v43, 0.0  ;;  %v2305_v53 = vsel %vm787_vm2, %v4769_v17, 0.0 }
 0x38f   : > { %v4847_v34 = vpop.eup %3434  ;;  %3440 = vpow2.f32 %v1810_v40  ;;  %v1358_v40 = vsel %vm787_vm2, %v4599_v13, 0.0  ;;  %v2286_v33 = vmul.f32 1.442695, %v2256_v11 }
 0x390   : > { %v4851_v61 = vpop.eup %3436  ;;  %3442 = vpow2.f32 %v1812_v25  ;;  %v2284_v2 = vmul.f32 1.442695, %v2255_v1 }
 0x391   : > { %v4857_v19 = vpop.eup %3438  ;;  %3444 = vpow2.f32 %v1814_v41 }
 0x392   : > { %3182 = vmatmul.msk.f32.gmra.mxu2 %vm787_vm2, %v4836_v7 }
 0x393   : > { %v1342_v58 = vpop.xlane.xlu0 %1341 }
 0x395   : > { %3142 = vmatmul.msk.f32.gmra.mxu0 %vm787_vm2, %v4840_v3  ;;  %v4863_v26 = vpop.eup %3440 }
 0x396   : > { %v4873_v44 = vpop.eup %3442 }
 0x397   : > { %2587 = vrot.lane.b32.xlu1 %v2017_v23, %s3606_s23  ;;  %v4883_v23 = vpop.eup %3444 }
 0x39a   : > { %3183 = vmatmul.msk.f32.gmra.mxu2 %vm787_vm2, %v4847_v34 }
 0x39d   : > { %3143 = vmatmul.msk.f32.gmra.mxu0 %vm787_vm2, %v4851_v61 }
 0x3a5   : > { %3144 = vmatmul.msk.f32.gmra.mxu0 %vm787_vm2, %v4857_v19 }
 0x3ad   : > { %3145 = vmatmul.msk.f32.gmra.mxu0 %vm787_vm2, %v4863_v26  ;;  %2294 = vadd.xlane.f32.xlu2 %v2293_v36 }
 0x3ae   : > { %v4871_v55 = vpop.xlane.xlu1 %1820 }
 0x3b5   : > { %3146 = vmatmul.msk.f32.gmra.mxu0 %vm787_vm2, %v4873_v44  ;;  %2297 = vadd.xlane.f32.xlu2 %v2296_v51  ;;  %v1355_v51 = vsel %vm787_vm2, %v4580_v45, 0.0 }
 0x3b6   : > { %v2232_v38 = vpop.xlane.xlu1 %2231 }
 0x3b7   : > { %2309 = vadd.xlane.f32.xlu0 %v2308_v37  ;;  %v2254_v16 = vsub.f32 %v4636_v15, %v2232_v38  ;;  %v4891_v15 = vpop.f32.mrf.mxu2  ;;  %v2292_v38 = vpop.xlane.xlu2 %2291 }
 0x3b9   : > { %v2282_v12 = vmul.f32 1.442695, %v2254_v16 }
 0x3bb   : > { %3446 = vpow2.f32 %v2282_v12 }
 0x3bc   : > { %3448 = vpow2.f32 %v2284_v2 }
 0x3bd   : > { %3147 = vmatmul.msk.f32.gmra.mxu0 %vm787_vm2, %v4883_v23  ;;  %2300 = vadd.xlane.f32.xlu2 %v2299_v27  ;;  %3450 = vpow2.f32 %v2286_v33  ;;  %v2427_v27 = vpop.f32.mrf.mxu1 }
 0x3be   : > { %3452 = vrcp.f32 %v1342_v58 }
 0x3bf   : > { %2312 = vadd.xlane.f32.xlu0 %v2311_v14  ;;  %v4904_v25 = vpop.f32.mrf.mxu2  ;;  %3454 = vrcp.f32 %v2292_v38  ;;  %v1956_v14 = vpop.f32.mrf.mxu0  ;;  %v1840_v38 = vsel %vm787_vm2, %v4816_v50, 0.0 }
 0x3c1   : > { %v4895_v42 = vpop.eup %3446  ;;  %1838 = vadd.xlane.f32.xlu1 %v1837_v49 }
 0x3c2   : > { %3184 = vmatmul.msk.f32.gmra.mxu2 %vm787_vm2, %v4895_v42  ;;  %v4906_v43 = vpop.eup %3448 }
 0x3c3   : > { %v4912_v31 = vpop.eup %3450 }
 0x3c4   : > { %v3453_v37 = vpop.eup %3452 }
 0x3c5   : > { %2303 = vadd.xlane.f32.xlu2 %v2302_v18  ;;  %v1545_v57 = vmul.f32 %v3453_v37, %v1485_v4  ;;  %v3455_v2 = vpop.eup %3454 }
 0x3c6   : > { %v2491_v60 = vmul.f32 %v3455_v2, %v2427_v27 }
 0x3c7   : > { %1359 = vadd.xlane.f32.xlu0 %v1358_v40  ;;  %v4916_v41 = vpop.f32.mrf.mxu2 }
 0x3c9   : > { %v1824_v36 = vpop.xlane.xlu1 %1823 }
 0x3ca   : > { %3185 = vmatmul.msk.f32.gmra.mxu2 %vm787_vm2, %v4906_v43 }
 0x3cd   : > { %2306 = vadd.xlane.f32.xlu2 %v2305_v53 }
 0x3cf   : > { %v4924_v12 = vpop.f32.mrf.mxu2 }
 0x3d1   : > { %v4914_v13 = vpop.xlane.xlu1 %1826 }
 0x3d2   : > { %3186 = vmatmul.msk.f32.gmra.mxu2 %vm787_vm2, %v4912_v31  ;;  %v1959_v4 = vpop.f32.mrf.mxu0 }
 0x3d5   : > { %1356 = vadd.xlane.f32.xlu2 %v1355_v51 }
 0x3d9   : > { %v2241_v16 = vpop.xlane.xlu1 %2240 }
 0x3da   : > { %v2257_v17 = vsub.f32 %v4754_v20, %v2241_v16  ;;  %v4932_v20 = vpop.f32.mrf.mxu2 }
 0x3db   : > { %2527 = vrot.lane.b32.xlu0 %v1545_v57, %s3605_s22 }
 0x3dc   : > { %v2288_v1 = vmul.f32 1.442695, %v2257_v17  ;;  %v1843_v17 = vsel %vm787_vm2, %v4827_v54, 0.0  ;;  %v2752_v54 = vld [vmem:[%s5308_s5 + $0x18] sm:$0xff] }
 0x3dd   : > { %2817 = vmatpush.msra.mxu3 %v2752_v54  ;;  %v2749_v54 = vld [vmem:[%s5308_s5] sm:$0xff] }
 0x3de   : > { %3456 = vpow2.f32 %v2288_v1  ;;  %v2524_v57 = vpop.permute.xlu2 %2523 }
 0x3df   : > { %3458 = vrcp.f32 %v1824_v36 }
 0x3e0   : > { %3460 = vrcp.f32 %v4871_v55  ;;  %v1345_v55 = vpop.xlane.xlu0 %1344 }
 0x3e2   : > { %v4936_v33 = vpop.f32.mrf.mxu2 }
 0x3e3   : > { %2651 = vrot.lane.b32.xlu0 %v2491_v60, %s3607_s28  ;;  %v2430_v60 = vpop.f32.mrf.mxu1 }
 0x3e4   : > { %v4927_v45 = vpop.eup %3456 }
 0x3e5   : > { %3187 = vmatmul.msk.f32.gmra.mxu2 %vm787_vm2, %v4927_v45  ;;  %v3459_v49 = vpop.eup %3458 }
 0x3e6   : > { %v2019_v11 = vmul.f32 %v3459_v49, %v1959_v4  ;;  %v3461_v18 = vpop.eup %3460 }
 0x3e7   : > { %v2018_v40 = vmul.f32 %v3461_v18, %v1956_v14 }
 0x3e8   : > { %v4944_v51 = vpop.xlane.xlu0 %1347 }
 0x3ea   : > { %v4938_v36 = vpop.f32.mrf.mxu2 }
 0x3eb   : > { %2591 = vrot.lane.b32.xlu0 %v2019_v11, %s3606_s23 }
 0x3ed   : > { %2589 = vrot.lane.b32.xlu2 %v2018_v40, %s3606_s23  ;;  %v2433_v40 = vpop.f32.mrf.mxu1 }
 0x3f0   : > { %v4950_v16 = vpop.xlane.xlu0 %1350 }
 0x3f2   : > { %v4940_v58 = vpop.f32.mrf.mxu2 }
 0x3f8   : > { %v4956_v27 = vpop.xlane.xlu0 %1353 }
 0x3fa   : > { %v4942_v53 = vpop.f32.mrf.mxu2 }
 0x400   : > { %v4958_v4 = vpop.permute.xlu0 %2525 }
 0x402   : > { %v4946_v37 = vpop.f32.mrf.mxu2 }
 0x40a   : > { %v4954_v1 = vpop.f32.mrf.mxu2 }
 0x412   : > { %v4960_v11 = vpop.f32.mrf.mxu2 }
 0x416   : > { %1841 = vadd.xlane.f32.xlu2 %v1840_v38 }
 0x41e   : > { %1844 = vadd.xlane.f32.xlu2 %v1843_v17 }
 0x420   : > { %v2295_v14 = vpop.xlane.xlu2 %2294 }
 0x421   : > { %3462 = vrcp.f32 %v2295_v14 }
 0x427   : > { %v3463_v2 = vpop.eup %3462 }
 0x428   : > { %v2298_v49 = vpop.xlane.xlu2 %2297  ;;  %v2492_v50 = vmul.f32 %v3463_v2, %v2430_v60  ;;  %v2751_v2 = vld [vmem:[%s5308_s5 + $0x10] sm:$0xff] }
 0x429   : > { %3464 = vrcp.f32 %v2298_v49  ;;  %2818 = vmatpush.msra.mxu3 %v2751_v2  ;;  %v4975_v49 = vpop.f32.mrf.mxu2 }
 0x42a   : > { %2653 = vrot.lane.b32.xlu1 %v2492_v50, %s3607_s28  ;;  %3466 = vrcp.f32 %v1345_v55  ;;  %v4966_v38 = vpop.xlane.xlu0 %2309  ;;  %v2750_v55 = vld [vmem:[%s5308_s5 + $0x8] sm:$0xff]  ;;  %5339 = vst [vmem:[#allocation24_spill] sm:$0xff] %v4975_v49 }
 0x42b   : > { %2819 = vmatpush.msra.mxu3 %v2750_v55 }
 0x42d   : > { %2820 = vmatpush.msra.mxu3 %v2749_v54 }
 0x42f   : > { %v3465_v18 = vpop.eup %3464 }
 0x430   : > { %v2301_v17 = vpop.xlane.xlu2 %2300  ;;  %v2493_v14 = vmul.f32 %v3465_v18, %v2433_v40  ;;  %v3467_v60 = vpop.eup %3466 }
 0x431   : > { %3468 = vrcp.f32 %v2301_v17  ;;  %v1546_v50 = vmul.f32 %v3467_v60, %v4891_v15  ;;  %v1830_v18 = vpop.xlane.xlu1 %1829  ;;  %v2436_v62 = vpop.f32.mrf.mxu2 }
 0x432   : > { %2655 = vrot.lane.b32.xlu0 %v2493_v14, %s3607_s28  ;;  %v4982_v2 = vpop.xlane.xlu0 %2312  ;;  %3470 = vrcp.f32 %v4472_v5  ;;  %v2317_v5 = vsel %vm787_vm2, %v4822_v56, 0.0  ;;  %v1962_v56 = vpop.f32.mrf.mxu0 }
 0x433   : > { %3472 = vrcp.f32 %v4914_v13 }
 0x434   : > { %3474 = vrcp.f32 %v4944_v51 }
 0x435   : > { %3476 = vrcp.f32 %v4950_v16 }
 0x436   : > { %2529 = vrot.lane.b32.xlu2 %v1546_v50, %s3605_s22 }
 0x437   : > { %v3469_v40 = vpop.eup %3468 }
 0x438   : > { %v2494_v22 = vmul.f32 %v3469_v40, %v2436_v62  ;;  %v3471_v60 = vpop.eup %3470 }
 0x439   : > { %v1833_v14 = vpop.xlane.xlu1 %1832  ;;  %v1061_v54 = vmul.f32 %v3471_v60, %v4617_v21  ;;  %v1361_v21 = vsel %vm787_vm2, %v4613_v24, 0.0  ;;  %v2304_v24 = vpop.xlane.xlu2 %2303 }
 0x43a   : > { %v4985_v17 = vpop.xlane.xlu0 %1359  ;;  %3478 = vrcp.f32 %v2304_v24  ;;  %v2439_v13 = vpop.f32.mrf.mxu2 }
 0x43b   : > { %v2699_v32 = vsel %vm649_vm1, %v1061_v54, %v2524_v57  ;;  %v1364_v57 = vsel %vm787_vm2, %v4665_v59, 0.0  ;;  %3480 = vrcp.f32 %v1830_v18  ;;  %v1965_v54 = vpop.f32.mrf.mxu0 }
 0x43c   : > { %3482 = vrcp.f32 %v1833_v14 }
 0x43d   : > { %3484 = vrcp.f32 %v4480_v28 }
 0x43e   : > { %2657 = vrot.lane.b32.xlu2 %v2494_v22, %s3607_s28  ;;  %v2314_v22 = vsel %vm787_vm2, %v4809_v6, 0.0  ;;  %v2320_v6 = vsel %vm787_vm2, %v4836_v7, 0.0  ;;  %3486 = vrcp.f32 %v4503_v47 }
 0x43f   : > { %3488 = vrcp.f32 %v4956_v27 }
 0x441   : > { %v4987_v55 = vpop.xlane.xlu1 %1835 }
 0x442   : > { %3490 = vrcp.f32 %v4987_v55 }
 0x449   : > { %v2588_v50 = vpop.permute.xlu1 %2587 }
 0x44a   : > { %v2716_v62 = vsel %vm2715_vm3, %v2699_v32, %v2588_v50  ;;  %v1846_v32 = vsel %vm787_vm2, %v4840_v3, 0.0 }
 0x44d   : > { %v4990_v15 = vpop.permute.xlu0 %2527 }
 0x451   : > { %v5021_v14 = vpop.xlane.xlu1 %1838 }
 0x454   : > { %2315 = vadd.xlane.f32.xlu1 %v2314_v22 }
 0x455   : > { %v2652_v40 = vpop.permute.xlu0 %2651 }
 0x456   : > { %v2733_v49 = vsel %vm2732_vm4, %v2716_v62, %v2652_v40 }
 0x457   : > { %3188 = vmatmul.msk.f32.vlgmr.msra.gmra.mxu3 %vm354_vm0, %v2733_v49  ;;  %v3473_v49 = vpop.eup %3472 }
 0x458   : > { %v2020_v60 = vmul.f32 %v3473_v49, %v1962_v56  ;;  %v3475_v59 = vpop.eup %3474 }
 0x459   : > { %v3477_v3 = vpop.eup %3476  ;;  %v1547_v7 = vmul.f32 %v3475_v59, %v4904_v25 }
 0x45a   : > { %v3479_v50 = vpop.eup %3478  ;;  %v1548_v51 = vmul.f32 %v3477_v3, %v4916_v41 }
 0x45b   : > { %v2495_v22 = vmul.f32 %v3479_v50, %v2439_v13  ;;  %v3481_v16 = vpop.eup %3480  ;;  %v1367_v50 = vsel %vm787_vm2, %v4674_v0, 0.0  ;;  %v2442_v13 = vpop.f32.mrf.mxu2 }
 0x45c   : > { %2318 = vadd.xlane.f32.xlu1 %v2317_v5  ;;  %1362 = vadd.xlane.f32.xlu0 %v1361_v21  ;;  %v3483_v62 = vpop.eup %3482  ;;  %v2021_v40 = vmul.f32 %v3481_v16, %v1965_v54  ;;  %v1968_v5 = vpop.f32.mrf.mxu0 }
 0x45d   : > { %v2022_v18 = vmul.f32 %v3483_v62, %v1968_v5  ;;  %v2307_v21 = vpop.xlane.xlu2 %2306  ;;  %v3485_v41 = vpop.eup %3484 }
 0x45e   : > { %v2592_v49 = vpop.permute.xlu0 %2591  ;;  %v3487_v59 = vpop.eup %3486  ;;  %3492 = vrcp.f32 %v2307_v21 }
 0x45f   : > { %v1063_v28 = vmul.f32 %v3487_v59, %v4640_v30  ;;  %v1370_v30 = vsel %vm787_vm2, %v4685_v8, 0.0  ;;  %v3489_v0 = vpop.eup %3488 }
 0x460   : > { %v1549_v8 = vmul.f32 %v3489_v0, %v4924_v12 }
 0x461   : > { %v2701_v47 = vsel %vm649_vm1, %v1063_v28, %v4990_v15  ;;  %v1852_v15 = vsel %vm787_vm2, %v4857_v19, 0.0  ;;  %v3491_v19 = vpop.eup %3490 }
 0x463   : > { %v2445_v62 = vpop.f32.mrf.mxu2 }
 0x464   : > { %1365 = vadd.xlane.f32.xlu0 %v1364_v57  ;;  %v1062_v57 = vmul.f32 %v3485_v41, %v4630_v46  ;;  %v2718_v46 = vsel %vm2715_vm3, %v2701_v47, %v2592_v49  ;;  %v1971_v16 = vpop.f32.mrf.mxu0 }
 0x465   : > { %v1357_v25 = vpop.xlane.xlu2 %1356 }
 0x466   : > { %3494 = vrcp.f32 %v1357_v25 }
 0x467   : > { %1847 = vadd.xlane.f32.xlu2 %v1846_v32  ;;  %3496 = vrcp.f32 %v4966_v38 }
 0x468   : > { %3498 = vrcp.f32 %v4982_v2 }
 0x46b   : > { %v2448_v21 = vpop.f32.mrf.mxu2 }
 0x46c   : > { %2321 = vadd.xlane.f32.xlu0 %v2320_v6  ;;  %v2700_v6 = vsel %vm649_vm1, %v1062_v57, %v4958_v4  ;;  %v1849_v4 = vsel %vm787_vm2, %v4851_v61, 0.0  ;;  %v1373_v61 = vsel %vm787_vm2, %v4695_v63, 0.0  ;;  %v2023_v63 = vmul.f32 %v3491_v19, %v1971_v16  ;;  %v5340_v57 = vld [vmem:[#allocation13_spill] sm:$0xff]  ;;  %v5343_v16 = vld [vmem:[#allocation3_spill] sm:$0xff] }
 0x46d   : > { %v2590_v32 = vpop.permute.xlu2 %2589  ;;  %3500 = vrcp.f32 %v5340_v57  ;;  %v2326_v19 = vsel %vm787_vm2, %v4895_v42, 0.0  ;;  %v1376_v42 = vsel %vm787_vm2, %v4712_v9, 0.0  ;;  %v5344_v57 = vld [vmem:[#allocation15_spill] sm:$0xff] }
 0x46e   : > { %v2717_v56 = vsel %vm2715_vm3, %v2700_v6, %v2590_v32 }
 0x475   : > { %2593 = vrot.lane.b32.xlu1 %v2020_v60, %s3606_s23 }
 0x47d   : > { %2531 = vrot.lane.b32.xlu1 %v1547_v7, %s3605_s22  ;;  %v2323_v7 = vsel %vm787_vm2, %v4847_v34, 0.0 }
 0x47f   : > { %2533 = vrot.lane.b32.xlu2 %v1548_v51, %s3605_s22  ;;  %v3493_v51 = vpop.eup %3492 }
 0x480   : > { %2659 = vrot.lane.b32.xlu0 %v2495_v22, %s3607_s28  ;;  %v3495_v22 = vpop.eup %3494  ;;  %v2496_v12 = vmul.f32 %v3493_v51, %v2442_v13 }
 0x481   : > { %v1550_v27 = vmul.f32 %v3495_v22, %v4932_v20  ;;  %v3497_v55 = vpop.eup %3496  ;;  %v5066_v20 = vld [vmem:[%s5309_s6] ss:$0 sm:$0xff]  ;;  %v1855_v22 = vsel %vm787_vm2, %v4863_v26, 0.0 }
 0x485   : > { %2595 = vrot.lane.b32.xlu1 %v2021_v40, %s3606_s23  ;;  %v3499_v40 = vpop.eup %3498 }
 0x486   : > { %v2498_v2 = vmul.f32 %v3499_v40, %v2448_v21  ;;  %v3501_v49 = vpop.eup %3500 }
 0x487   : > { %2597 = vrot.lane.b32.xlu2 %v2022_v18, %s3606_s23  ;;  %v2497_v18 = vmul.f32 %v3497_v55, %v2445_v62  ;;  %v2329_v62 = vsel %vm787_vm2, %v4906_v43, 0.0 }
 0x489   : > { %v1842_v34 = vpop.xlane.xlu2 %1841 }
 0x491   : > { %v5058_v5 = vpop.xlane.xlu2 %1844 }
 0x499   : > { %v2530_v6 = vpop.permute.xlu2 %2529 }
 0x49c   : > { %v2654_v24 = vpop.permute.xlu1 %2653 }
 0x49d   : > { %v2734_v60 = vsel %vm2732_vm4, %v2717_v56, %v2654_v24  ;;  %v5341_v24 = vld [vmem:[#allocation16_spill] sm:$0xff] }
 0x49e   : > { %3189 = vmatmul.msk.f32.gmra.mxu3 %vm354_vm0, %v2734_v60  ;;  %v1064_v60 = vmul.f32 %v3501_v49, %v5341_v24 }
 0x4a0   : > { %v2702_v28 = vsel %vm649_vm1, %v1064_v60, %v2530_v6 }
 0x4a4   : > { %v2656_v3 = vpop.permute.xlu0 %2655 }
 0x4a5   : > { %v2735_v54 = vsel %vm2732_vm4, %v2718_v46, %v2656_v3  ;;  %v2658_v46 = vpop.permute.xlu2 %2657 }
 0x4a6   : > { %3190 = vmatmul.msk.f32.gmra.mxu3 %vm354_vm0, %v2735_v54 }
 0x4aa   : > { %1850 = vadd.xlane.f32.xlu0 %v1849_v4  ;;  %v5342_v4 = vld [vmem:[#allocation14_spill] sm:$0xff] }
 0x4ab   : > { %3502 = vrcp.f32 %v5342_v4 }
 0x4ac   : > { %3504 = vrcp.f32 %v1842_v34 }
 0x4ad   : > { %3506 = vrcp.f32 %v5021_v14 }
 0x4ae   : > { %3508 = vrcp.f32 %v4985_v17 }
 0x4af   : > { %1368 = vadd.xlane.f32.xlu1 %v1367_v50  ;;  %3510 = vrcp.f32 %v5344_v57 }
 0x4b0   : > { %1371 = vadd.xlane.f32.xlu2 %v1370_v30 }
 0x4b2   : > { %1853 = vadd.xlane.f32.xlu0 %v1852_v15  ;;  %v3503_v15 = vpop.eup %3502 }
 0x4b3   : > { %v3505_v26 = vpop.eup %3504 }
 0x4b7   : > { %2324 = vadd.xlane.f32.xlu1 %v2323_v7  ;;  %v1065_v7 = vmul.f32 %v3503_v15, %v4660_v52  ;;  %v911_v52 = vsel %vm787_vm2, %v5343_v16, 0.0 }
 0x4b8   : > { %1374 = vadd.xlane.f32.xlu2 %v1373_v61 }
 0x4c6   : > { %2535 = vrot.lane.b32.xlu0 %v1549_v8, %s3605_s22 }
 0x4c7   : > { %v5060_v38 = vpop.xlane.xlu1 %2315 }
 0x4ce   : > { %2599 = vrot.lane.b32.xlu0 %v2023_v63, %s3606_s23  ;;  %v1974_v63 = vpop.f32.mrf.mxu0 }
 0x4cf   : > { %v5078_v32 = vpop.xlane.xlu0 %1362  ;;  %v5082_v56 = vpop.xlane.xlu1 %2318 }
 0x4d0   : > { %2537 = vrot.lane.b32.xlu2 %v1550_v27, %s3605_s22  ;;  %2661 = vrot.lane.b32.xlu1 %v2496_v12, %s3607_s28  ;;  %v3507_v27 = vpop.eup %3506 }
 0x4d1   : > { %v3509_v55 = vpop.eup %3508  ;;  %v2024_v43 = vmul.f32 %v3507_v27, %v1974_v63 }
 0x4d2   : > { %v3511_v24 = vpop.eup %3510 }
 0x4d3   : > { %v1066_v60 = vmul.f32 %v3511_v24, %v4672_v39  ;;  %v1858_v39 = vsel %vm787_vm2, %v4873_v44, 0.0  ;;  %v1379_v44 = vsel %vm787_vm2, %v4721_v10, 0.0 }
 0x4d6   : > { %2663 = vrot.lane.b32.xlu0 %v2497_v18, %s3607_s28  ;;  %v1977_v12 = vpop.f32.mrf.mxu0  ;;  %v1551_v18 = vmul.f32 %v3509_v55, %v4936_v33 }
 0x4d7   : > { %v5085_v59 = vpop.xlane.xlu0 %1365  ;;  %v2025_v40 = vmul.f32 %v3505_v26, %v1977_v12 }
 0x4d8   : > { %2665 = vrot.lane.b32.xlu2 %v2498_v2, %s3607_s28 }
 0x4da   : > { %v2822_v25 = vpop.f32.mrf.mxu3  ;;  %v1848_v2 = vpop.xlane.xlu2 %1847 }
 0x4db   : > { %v2823_v41 = vadd.f32 %v5066_v20, %v2822_v25 }
 0x4dd   : > { %2870 = vst.msk [vmem:[%s5074_s18] sm:$0xff] %vm354_vm0, %v2823_v41 }
 0x4df   : > { %v5092_v30 = vpop.xlane.xlu0 %2321 }
 0x4e2   : > { %v2534_v33 = vpop.permute.xlu2 %2533 }
 0x4e7   : > { %v2594_v47 = vpop.permute.xlu1 %2593 }
 0x4e8   : > { %v2719_v3 = vsel %vm2715_vm3, %v2702_v28, %v2594_v47  ;;  %v5345_v47 = vld [vmem:[#allocation10_spill] sm:$0xff] }
 0x4e9   : > { %v2736_v54 = vsel %vm2732_vm4, %v2719_v3, %v2658_v46  ;;  %3512 = vrcp.f32 %v5345_v47  ;;  %v2704_v3 = vsel %vm649_vm1, %v1066_v60, %v2534_v33 }
 0x4ea   : > { %3191 = vmatmul.msk.f32.gmra.mxu3 %vm354_vm0, %v2736_v54  ;;  %v2598_v28 = vpop.permute.xlu2 %2597  ;;  %v5346_v54 = vld [vmem:[#allocation4_spill] sm:$0xff]  ;;  %3514 = vrcp.f32 %v5060_v38 }
 0x4eb   : > { %v914_v4 = vsel %vm787_vm2, %v5346_v54, 0.0  ;;  %3516 = vrcp.f32 %v5082_v56 }
 0x4ec   : > { %3518 = vrcp.f32 %v5078_v32 }
 0x4ed   : > { %3520 = vrcp.f32 %v5058_v5 }
 0x4ee   : > { %3522 = vrcp.f32 %v1848_v2 }
 0x4ef   : > { %v2532_v50 = vpop.permute.xlu1 %2531  ;;  %3524 = vrcp.f32 %v5092_v30 }
 0x4f0   : > { %v2703_v61 = vsel %vm649_vm1, %v1065_v7, %v2532_v50  ;;  %v2721_v50 = vsel %vm2715_vm3, %v2704_v3, %v2598_v28 }
 0x4f2   : > { %v2660_v13 = vpop.permute.xlu0 %2659 }
 0x4f7   : > { %v2596_v0 = vpop.permute.xlu1 %2595 }
 0x4f8   : > { %v2720_v8 = vsel %vm2715_vm3, %v2703_v61, %v2596_v0  ;;  %v2332_v61 = vsel %vm787_vm2, %v4912_v31, 0.0  ;;  %v3513_v0 = vpop.eup %3512 }
 0x4f9   : > { %v2737_v51 = vsel %vm2732_vm4, %v2720_v8, %v2660_v13  ;;  %v1067_v13 = vmul.f32 %v3513_v0, %v4683_v29  ;;  %v2451_v29 = vpop.f32.mrf.mxu2  ;;  %v3515_v31 = vpop.eup %3514 }
 0x4fa   : > { %2327 = vadd.xlane.f32.xlu1 %v2326_v19  ;;  %3192 = vmatmul.msk.f32.gmra.mxu3 %vm354_vm0, %v2737_v51  ;;  %v2335_v51 = vsel %vm787_vm2, %v4927_v45, 0.0  ;;  %v3517_v45 = vpop.eup %3516 }
 0x500   : > { %1856 = vadd.xlane.f32.xlu0 %v1855_v22 }
 0x501   : > { %912 = vadd.xlane.f32.xlu2 %v911_v52  ;;  %v2499_v52 = vmul.f32 %v3515_v31, %v2451_v29  ;;  %v2454_v63 = vpop.f32.mrf.mxu2 }
 0x502   : > { %2330 = vadd.xlane.f32.xlu1 %v2329_v62  ;;  %v3519_v62 = vpop.eup %3518  ;;  %v2500_v10 = vmul.f32 %v3517_v45, %v2454_v63 }
 0x503   : > { %v1552_v26 = vmul.f32 %v3519_v62, %v4938_v36  ;;  %v3521_v38 = vpop.eup %3520 }
 0x504   : > { %v3523_v32 = vpop.eup %3522 }
 0x505   : > { %v3525_v5 = vpop.eup %3524 }
 0x508   : > { %1377 = vadd.xlane.f32.xlu0 %v1376_v42  ;;  %v1980_v42 = vpop.f32.mrf.mxu0 }
 0x509   : > { %v2026_v12 = vmul.f32 %v3521_v38, %v1980_v42 }
 0x510   : > { %v1983_v56 = vpop.f32.mrf.mxu0 }
 0x511   : > { %v2027_v27 = vmul.f32 %v3523_v32, %v1983_v56 }
 0x519   : > { %2603 = vrot.lane.b32.xlu2 %v2025_v40, %s3606_s23  ;;  %v2457_v40 = vpop.f32.mrf.mxu2 }
 0x51b   : > { %2601 = vrot.lane.b32.xlu1 %v2024_v43, %s3606_s23 }
 0x51c   : > { %2539 = vrot.lane.b32.xlu0 %v1551_v18, %s3605_s22  ;;  %v2501_v18 = vmul.f32 %v3525_v5, %v2457_v40 }
 0x51d   : > { %v5118_v17 = vpop.xlane.xlu0 %1850 }
 0x521   : > { %v2825_v9 = vpop.f32.mrf.mxu3 }
 0x522   : > { %v2826_v14 = vadd.f32 %v5066_v20, %v2825_v9  ;;  %v1369_v25 = vpop.xlane.xlu1 %1368 }
 0x523   : > { %3526 = vrcp.f32 %v1369_v25  ;;  %v1372_v43 = vpop.xlane.xlu2 %1371  ;;  %v2460_v25 = vpop.f32.mrf.mxu2 }
 0x524   : > { %2871 = vst.msk [vmem:[%s5074_s18 + $0x8] sm:$0xff] %vm354_vm0, %v2826_v14 }
 0x525   : > { %v5123_v41 = vpop.xlane.xlu0 %1853 }
 0x529   : > { %v2828_v34 = vpop.f32.mrf.mxu3  ;;  %v3527_v30 = vpop.eup %3526 }
 0x52a   : > { %v2829_v21 = vadd.f32 %v5066_v20, %v2828_v34  ;;  %v2325_v49 = vpop.xlane.xlu1 %2324  ;;  %v1554_v9 = vmul.f32 %v3527_v30, %v4942_v53  ;;  %v1861_v53 = vsel %vm787_vm2, %v4883_v23, 0.0 }
 0x52b   : > { %3528 = vrcp.f32 %v2325_v49  ;;  %v1375_v14 = vpop.xlane.xlu2 %1374  ;;  %v2463_v29 = vpop.f32.mrf.mxu2 }
 0x52c   : > { %2872 = vst.msk [vmem:[%s5074_s18 + $0x10] sm:$0xff] %vm354_vm0, %v2829_v21 }
 0x531   : > { %v3529_v21 = vpop.eup %3528 }
 0x532   : > { %v2502_v57 = vmul.f32 %v3529_v21, %v2460_v25  ;;  %v5352_v25 = vld [vmem:[#allocation24_spill] sm:$0xff] }
 0x533   : > { %v2538_v49 = vpop.permute.xlu2 %2537  ;;  %v2466_v42 = vpop.f32.mrf.mxu2 }
 0x538   : > { %v2536_v6 = vpop.permute.xlu0 %2535 }
 0x539   : > { %v2705_v19 = vsel %vm649_vm1, %v1067_v13, %v2536_v6  ;;  %v5347_v6 = vld [vmem:[#allocation12_spill] sm:$0xff]  ;;  %v5349_v13 = vld [vmem:[#allocation7_spill] sm:$0xff] }
 0x53a   : > { %3530 = vrcp.f32 %v5347_v6  ;;  %v5353_v6 = vld [vmem:[#allocation17_spill] sm:$0xff] }
 0x53b   : > { %v2666_v3 = vpop.permute.xlu2 %2665  ;;  %3532 = vrcp.f32 %v5085_v59 }
 0x53c   : > { %3534 = vrcp.f32 %v5118_v17 }
 0x53d   : > { %3536 = vrcp.f32 %v1372_v43  ;;  %v2469_v43 = vpop.f32.mrf.mxu2 }
 0x53e   : > { %3538 = vrcp.f32 %v5123_v41 }
 0x53f   : > { %3540 = vrcp.f32 %v1375_v14 }
 0x540   : > { %v2600_v46 = vpop.permute.xlu0 %2599  ;;  %v3531_v60 = vpop.eup %3530 }
 0x541   : > { %v2722_v22 = vsel %vm2715_vm3, %v2705_v19, %v2600_v46  ;;  %v1068_v28 = vmul.f32 %v3531_v60, %v4699_v35  ;;  %v3533_v23 = vpop.eup %3532 }
 0x542   : > { %915 = vadd.xlane.f32.xlu2 %v914_v4  ;;  %v2662_v15 = vpop.permute.xlu1 %2661  ;;  %v1553_v35 = vmul.f32 %v3533_v23, %v4940_v58 }
 0x543   : > { %v2738_v7 = vsel %vm2732_vm4, %v2721_v50, %v2662_v15  ;;  %v2706_v47 = vsel %vm649_vm1, %v1068_v28, %v2538_v49  ;;  %v5348_v50 = vld [vmem:[#allocation5_spill] sm:$0xff] }
 0x544   : > { %3193 = vmatmul.msk.f32.gmra.mxu3 %vm354_vm0, %v2738_v7  ;;  %v917_v15 = vsel %vm787_vm2, %v5348_v50, 0.0  ;;  %v3535_v7 = vpop.eup %3534 }
 0x545   : > { %1859 = vadd.xlane.f32.xlu1 %v1858_v39  ;;  %v1986_v39 = vpop.f32.mrf.mxu0  ;;  %v3537_v19 = vpop.eup %3536 }
 0x546   : > { %2333 = vadd.xlane.f32.xlu0 %v2332_v61  ;;  %v2028_v61 = vmul.f32 %v3535_v7, %v1986_v39  ;;  %v1555_v59 = vmul.f32 %v3537_v19, %v4946_v37  ;;  %v3539_v17 = vpop.eup %3538  ;;  %v5350_v37 = vld [vmem:[#allocation11_spill] sm:$0xff] }
 0x547   : > { %v3541_v31 = vpop.eup %3540 }
 0x548   : > { %v2664_v8 = vpop.permute.xlu0 %2663  ;;  %v1556_v41 = vmul.f32 %v3541_v31, %v4954_v1  ;;  %v5351_v1 = vld [vmem:[#allocation6_spill] sm:$0xff] }
 0x549   : > { %v2739_v16 = vsel %vm2732_vm4, %v2722_v22, %v2664_v8  ;;  %v923_v8 = vsel %vm787_vm2, %v5349_v13, 0.0  ;;  %v5355_v31 = vld [vmem:[#allocation18_spill] sm:$0xff] }
 0x54a   : > { %2336 = vadd.xlane.f32.xlu2 %v2335_v51 }
 0x54c   : > { %3194 = vmatmul.msk.f32.gmra.mxu3 %vm354_vm0, %v2739_v16 }
 0x54d   : > { %v1989_v51 = vpop.f32.mrf.mxu0 }
 0x54e   : > { %1380 = vadd.xlane.f32.xlu0 %v1379_v44  ;;  %v2029_v22 = vmul.f32 %v3539_v17, %v1989_v51 }
 0x555   : > { %v1992_v7 = vpop.f32.mrf.mxu0 }
 0x55e   : > { %2667 = vrot.lane.b32.xlu1 %v2499_v52, %s3607_s28 }
 0x562   : > { %2669 = vrot.lane.b32.xlu2 %v2500_v10, %s3607_s28  ;;  %2541 = vrot.lane.b32.xlu0 %v1552_v26, %s3605_s22 }
 0x56a   : > { %2607 = vrot.lane.b32.xlu2 %v2027_v27, %s3606_s23  ;;  %2605 = vrot.lane.b32.xlu0 %v2026_v12, %s3606_s23  ;;  %v920_v27 = vsel %vm787_vm2, %v5351_v1, 0.0 }
 0x56d   : > { %v2831_v55 = vpop.f32.mrf.mxu3  ;;  %v5164_v34 = vpop.xlane.xlu1 %2327 }
 0x56e   : > { %v2832_v36 = vadd.f32 %v5066_v20, %v2831_v55 }
 0x570   : > { %2873 = vst.msk [vmem:[%s5074_s18 + $0x18] sm:$0xff] %vm354_vm0, %v2832_v36 }
 0x572   : > { %2671 = vrot.lane.b32.xlu2 %v2501_v18, %s3607_s28 }
 0x573   : > { %v5186_v0 = vpop.xlane.xlu0 %1856 }
 0x574   : > { %v913_v16 = vpop.xlane.xlu2 %912 }
 0x575   : > { %v5171_v24 = vpop.xlane.xlu1 %2330 }
 0x57a   : > { %2545 = vrot.lane.b32.xlu2 %v1554_v9, %s3605_s22 }
 0x57b   : > { %v1378_v58 = vpop.xlane.xlu0 %1377 }
 0x57c   : > { %3542 = vrcp.f32 %v1378_v58  ;;  %v2604_v45 = vpop.permute.xlu2 %2603 }
 0x57d   : > { %v2834_v2 = vpop.f32.mrf.mxu3  ;;  %3544 = vrcp.f32 %v5350_v37 }
 0x57e   : > { %v2835_v33 = vadd.f32 %v5066_v20, %v2834_v2 }
 0x580   : > { %2874 = vst.msk [vmem:[%s5074_s18 + $0x20] sm:$0xff] %vm354_vm0, %v2835_v33 }
 0x582   : > { %2673 = vrot.lane.b32.xlu2 %v2502_v57, %s3607_s28  ;;  %v3543_v62 = vpop.eup %3542 }
 0x583   : > { %v1557_v32 = vmul.f32 %v3543_v62, %v4960_v11  ;;  %v3545_v56 = vpop.eup %3544 }
 0x584   : > { %v1069_v12 = vmul.f32 %v3545_v56, %v4718_v48 }
 0x588   : > { %1862 = vadd.xlane.f32.xlu1 %v1861_v53 }
 0x58d   : > { %v2602_v46 = vpop.permute.xlu1 %2601 }
 0x58e   : > { %v2723_v54 = vsel %vm2715_vm3, %v2706_v47, %v2602_v46  ;;  %v2540_v44 = vpop.permute.xlu0 %2539 }
 0x58f   : > { %v2740_v4 = vsel %vm2732_vm4, %v2723_v54, %v2666_v3  ;;  %v2707_v55 = vsel %vm649_vm1, %v1069_v12, %v2540_v44  ;;  %v5357_v12 = vld [vmem:[#allocation9_spill] sm:$0xff] }
 0x590   : > { %3195 = vmatmul.msk.f32.gmra.mxu3 %vm354_vm0, %v2740_v4  ;;  %v2724_v30 = vsel %vm2715_vm3, %v2707_v55, %v2604_v45  ;;  %v2472_v4 = vpop.f32.mrf.mxu2 }
 0x594   : > { %918 = vadd.xlane.f32.xlu0 %v917_v15 }
 0x5a1   : > { %2543 = vrot.lane.b32.xlu1 %v1553_v35, %s3605_s22 }
 0x5a8   : > { %2609 = vrot.lane.b32.xlu0 %v2028_v61, %s3606_s23 }
 0x5ab   : > { %924 = vadd.xlane.f32.xlu2 %v923_v8  ;;  %v1995_v8 = vpop.f32.mrf.mxu0 }
 0x5b0   : > { %2547 = vrot.lane.b32.xlu0 %v1555_v59, %s3605_s22 }
 0x5b3   : > { %v1998_v51 = vpop.f32.mrf.mxu0 }
 0x5b5   : > { %v5199_v38 = vpop.xlane.xlu2 %915 }
 0x5b8   : > { %2611 = vrot.lane.b32.xlu0 %v2029_v22, %s3606_s23  ;;  %v1860_v10 = vpop.xlane.xlu1 %1859 }
 0x5b9   : > { %v2334_v52 = vpop.xlane.xlu0 %2333 }
 0x5ba   : > { %3546 = vrcp.f32 %v2334_v52 }
 0x5bd   : > { %v2337_v48 = vpop.xlane.xlu2 %2336 }
 0x5c0   : > { %v3547_v36 = vpop.eup %3546 }
 0x5c1   : > { %v1381_v5 = vpop.xlane.xlu0 %1380  ;;  %v2505_v14 = vmul.f32 %v3547_v36, %v2469_v43 }
 0x5c2   : > { %3548 = vrcp.f32 %v1381_v5  ;;  %v929_v5 = vsel %vm787_vm2, %v5357_v12, 0.0 }
 0x5c3   : > { %2549 = vrot.lane.b32.xlu2 %v1556_v41, %s3605_s22  ;;  %3550 = vrcp.f32 %v913_v16 }
 0x5c4   : > { %3552 = vrcp.f32 %v2337_v48 }
 0x5c5   : > { %3554 = vrcp.f32 %v5164_v34  ;;  %v2670_v28 = vpop.permute.xlu2 %2669  ;;  %v5354_v34 = vld [vmem:[#allocation8_spill] sm:$0xff] }
 0x5c6   : > { %3556 = vrcp.f32 %v5186_v0  ;;  %v926_v50 = vsel %vm787_vm2, %v5354_v34, 0.0 }
 0x5c7   : > { %v2837_v63 = vpop.f32.mrf.mxu3  ;;  %3558 = vrcp.f32 %v5171_v24 }
 0x5c8   : > { %v2838_v26 = vadd.f32 %v5066_v20, %v2837_v63  ;;  %v3549_v2 = vpop.eup %3548  ;;  %3560 = vrcp.f32 %v1860_v10  ;;  %v5356_v10 = vld [vmem:[#allocation19_spill] sm:$0xff] }
 0x5c9   : > { %v3551_v33 = vpop.eup %3550  ;;  %v1558_v57 = vmul.f32 %v3549_v2, %v5352_v25 }
 0x5ca   : > { %2875 = vst.msk [vmem:[%s5074_s18 + $0x28] sm:$0xff] %vm354_vm0, %v2838_v26  ;;  %v1070_v49 = vmul.f32 %v3551_v33, %v5353_v6  ;;  %v3553_v46 = vpop.eup %3552 }
 0x5cb   : > { %921 = vadd.xlane.f32.xlu1 %v920_v27  ;;  %2551 = vrot.lane.b32.xlu2 %v1557_v32, %s3605_s22  ;;  %v3555_v54 = vpop.eup %3554  ;;  %v2506_v15 = vmul.f32 %v3553_v46, %v2472_v4 }
 0x5cc   : > { %v2503_v23 = vmul.f32 %v3555_v54, %v2463_v29  ;;  %v3557_v35 = vpop.eup %3556 }
 0x5cd   : > { %v2030_v39 = vmul.f32 %v3557_v35, %v1992_v7  ;;  %v3559_v61 = vpop.eup %3558  ;;  %v2608_v58 = vpop.permute.xlu2 %2607 }
 0x5ce   : > { %v3561_v0 = vpop.eup %3560  ;;  %v2504_v13 = vmul.f32 %v3559_v61, %v2466_v42 }
 0x5cf   : > { %v2840_v40 = vpop.f32.mrf.mxu3  ;;  %v2031_v19 = vmul.f32 %v3561_v0, %v1995_v8 }
 0x5d0   : > { %v2841_v11 = vadd.f32 %v5066_v20, %v2840_v40  ;;  %v2668_v18 = vpop.permute.xlu1 %2667 }
 0x5d1   : > { %v2741_v9 = vsel %vm2732_vm4, %v2724_v30, %v2668_v18 }
 0x5d2   : > { %2876 = vst.msk [vmem:[%s5074_s18 + $0x30] sm:$0xff] %vm354_vm0, %v2841_v11  ;;  %3196 = vmatmul.msk.f32.gmra.mxu3 %vm354_vm0, %v2741_v9  ;;  %v5358_v11 = vld [vmem:[#allocation20_spill] sm:$0xff] }
 0x5d3   : > { %2679 = vrot.lane.b32.xlu2 %v2505_v14, %s3607_s28 }
 0x5d4   : > { %v2542_v21 = vpop.permute.xlu0 %2541 }
 0x5d5   : > { %v2708_v53 = vsel %vm649_vm1, %v1070_v49, %v2542_v21  ;;  %v2672_v24 = vpop.permute.xlu2 %2671 }
 0x5db   : > { %2553 = vrot.lane.b32.xlu2 %v1558_v57, %s3605_s22 }
 0x5dc   : > { %v2606_v60 = vpop.permute.xlu0 %2605 }
 0x5dd   : > { %v2725_v47 = vsel %vm2715_vm3, %v2708_v53, %v2606_v60  ;;  %v2546_v29 = vpop.permute.xlu2 %2545  ;;  %v5359_v60 = vld [vmem:[#allocation21_spill] sm:$0xff] }
 0x5de   : > { %v2742_v3 = vsel %vm2732_vm4, %v2725_v47, %v2670_v28 }
 0x5df   : > { %3197 = vmatmul.msk.f32.gmra.mxu3 %vm354_vm0, %v2742_v3 }
 0x5e2   : > { %927 = vadd.xlane.f32.xlu0 %v926_v50 }
 0x5e3   : > { %2681 = vrot.lane.b32.xlu2 %v2506_v15, %s3607_s28  ;;  %v5360_v15 = vld [vmem:[#allocation22_spill] sm:$0xff] }
 0x5e4   : > { %2675 = vrot.lane.b32.xlu1 %v2503_v23, %s3607_s28 }
 0x5e5   : > { %v2674_v27 = vpop.permute.xlu2 %2673 }
 0x5ec   : > { %2613 = vrot.lane.b32.xlu1 %v2030_v39, %s3606_s23 }
 0x5f4   : > { %2677 = vrot.lane.b32.xlu1 %v2504_v13, %s3607_s28 }
 0x5f6   : > { %2615 = vrot.lane.b32.xlu0 %v2031_v19, %s3606_s23 }
 0x5fb   : > { %v1863_v59 = vpop.xlane.xlu1 %1862 }
 0x5fc   : > { %3562 = vrcp.f32 %v1863_v59 }
 0x5fd   : > { %3564 = vrcp.f32 %v5199_v38 }
 0x602   : > { %v3563_v17 = vpop.eup %3562 }
 0x603   : > { %v2032_v22 = vmul.f32 %v3563_v17, %v1998_v51  ;;  %v3565_v44 = vpop.eup %3564 }
 0x604   : > { %v1071_v45 = vmul.f32 %v3565_v44, %v5355_v31 }
 0x605   : > { %2617 = vrot.lane.b32.xlu0 %v2032_v22, %s3606_s23 }
 0x607   : > { %v919_v16 = vpop.xlane.xlu0 %918 }
 0x608   : > { %3566 = vrcp.f32 %v919_v16 }
 0x60e   : > { %v3567_v41 = vpop.eup %3566 }
 0x60f   : > { %v1072_v26 = vmul.f32 %v3567_v41, %v5356_v10 }
 0x611   : > { %v2710_v32 = vsel %vm649_vm1, %v1072_v26, %v2546_v29 }
 0x613   : > { %v2544_v52 = vpop.permute.xlu1 %2543  ;;  %v2843_v37 = vpop.f32.mrf.mxu3 }
 0x614   : > { %v2709_v62 = vsel %vm649_vm1, %v1071_v45, %v2544_v52  ;;  %v2844_v42 = vadd.f32 %v5066_v20, %v2843_v37 }
 0x615   : > { %v2726_v63 = vsel %vm2715_vm3, %v2709_v62, %v2608_v58  ;;  %v5361_v58 = vld [vmem:[#allocation23_spill] sm:$0xff] }
 0x616   : > { %2877 = vst.msk [vmem:[%s5074_s18 + $0x38] sm:$0xff] %vm354_vm0, %v2844_v42  ;;  %v2743_v38 = vsel %vm2732_vm4, %v2726_v63, %v2672_v24 }
 0x617   : > { %3198 = vmatmul.msk.f32.gmra.mxu3 %vm354_vm0, %v2743_v38 }
 0x61a   : > { %v2610_v56 = vpop.permute.xlu0 %2609 }
 0x61b   : > { %v2727_v1 = vsel %vm2715_vm3, %v2710_v32, %v2610_v56 }
 0x61c   : > { %v2744_v55 = vsel %vm2732_vm4, %v2727_v1, %v2674_v27 }
 0x61e   : > { %930 = vadd.xlane.f32.xlu1 %v929_v5  ;;  %v925_v30 = vpop.xlane.xlu2 %924 }
 0x61f   : > { %3199 = vmatmul.msk.f32.gmra.mxu3 %vm354_vm0, %v2744_v55 }
 0x622   : > { %v2548_v40 = vpop.permute.xlu0 %2547 }
 0x626   : > { %v2550_v57 = vpop.permute.xlu2 %2549 }
 0x62a   : > { %v2612_v9 = vpop.permute.xlu0 %2611 }
 0x62e   : > { %v2552_v54 = vpop.permute.xlu2 %2551 }
 0x636   : > { %v2680_v0 = vpop.permute.xlu2 %2679 }
 0x63e   : > { %v922_v36 = vpop.xlane.xlu1 %921  ;;  %v2554_v19 = vpop.permute.xlu2 %2553 }
 0x63f   : > { %3568 = vrcp.f32 %v922_v36 }
 0x640   : > { %3570 = vrcp.f32 %v925_v30 }
 0x645   : > { %v3569_v43 = vpop.eup %3568 }
 0x646   : > { %v1073_v18 = vmul.f32 %v3569_v43, %v5358_v11  ;;  %v3571_v49 = vpop.eup %3570  ;;  %v2682_v44 = vpop.permute.xlu2 %2681 }
 0x647   : > { %v1074_v28 = vmul.f32 %v3571_v49, %v5359_v60 }
 0x648   : > { %v2711_v14 = vsel %vm649_vm1, %v1073_v18, %v2548_v40 }
 0x649   : > { %v2728_v33 = vsel %vm2715_vm3, %v2711_v14, %v2612_v9  ;;  %v2712_v4 = vsel %vm649_vm1, %v1074_v28, %v2550_v57 }
 0x655   : > { %v2846_v48 = vpop.f32.mrf.mxu3  ;;  %v928_v6 = vpop.xlane.xlu0 %927 }
 0x656   : > { %v2847_v21 = vadd.f32 %v5066_v20, %v2846_v48  ;;  %v2676_v2 = vpop.permute.xlu1 %2675  ;;  %3572 = vrcp.f32 %v928_v6 }
 0x657   : > { %v2745_v25 = vsel %vm2732_vm4, %v2728_v33, %v2676_v2 }
 0x658   : > { %2878 = vst.msk [vmem:[%s5074_s18 + $0x40] sm:$0xff] %vm354_vm0, %v2847_v21  ;;  %3200 = vmatmul.msk.f32.gmra.mxu3 %vm354_vm0, %v2745_v25 }
 0x65c   : > { %v3573_v3 = vpop.eup %3572 }
 0x65d   : > { %v1075_v23 = vmul.f32 %v3573_v3, %v5360_v15 }
 0x65e   : > { %v2614_v53 = vpop.permute.xlu1 %2613 }
 0x65f   : > { %v2729_v34 = vsel %vm2715_vm3, %v2712_v4, %v2614_v53  ;;  %v2713_v39 = vsel %vm649_vm1, %v1075_v23, %v2552_v54 }
 0x662   : > { %v2849_v47 = vpop.f32.mrf.mxu3 }
 0x663   : > { %v2850_v46 = vadd.f32 %v5066_v20, %v2849_v47 }
 0x665   : > { %2879 = vst.msk [vmem:[%s5074_s18 + $0x48] sm:$0xff] %vm354_vm0, %v2850_v46 }
 0x666   : > { %v2678_v50 = vpop.permute.xlu1 %2677 }
 0x667   : > { %v2746_v35 = vsel %vm2732_vm4, %v2729_v34, %v2678_v50 }
 0x668   : > { %3201 = vmatmul.msk.f32.gmra.mxu3 %vm354_vm0, %v2746_v35  ;;  %v2616_v7 = vpop.permute.xlu0 %2615 }
 0x669   : > { %v2730_v61 = vsel %vm2715_vm3, %v2713_v39, %v2616_v7 }
 0x66a   : > { %v2747_v13 = vsel %vm2732_vm4, %v2730_v61, %v2680_v0 }
 0x670   : > { %3202 = vmatmul.msk.f32.gmra.mxu3 %vm354_vm0, %v2747_v13 }
 0x677   : > { %v2618_v22 = vpop.permute.xlu0 %2617 }
 0x691   : > { %v931_v8 = vpop.xlane.xlu1 %930 }
 0x692   : > { %3574 = vrcp.f32 %v931_v8 }
 0x698   : > { %v3575_v59 = vpop.eup %3574 }
 0x699   : > { %v1076_v17 = vmul.f32 %v3575_v59, %v5361_v58 }
 0x69a   : > { %v2852_v51 = vpop.f32.mrf.mxu3 }
 0x69b   : > { %v2853_v24 = vadd.f32 %v5066_v20, %v2852_v51  ;;  %v2714_v16 = vsel %vm649_vm1, %v1076_v17, %v2554_v19 }
 0x69c   : > { %v2731_v29 = vsel %vm2715_vm3, %v2714_v16, %v2618_v22 }
 0x69d   : > { %2880 = vst.msk [vmem:[%s5074_s18 + $0x50] sm:$0xff] %vm354_vm0, %v2853_v24  ;;  %v2748_v31 = vsel %vm2732_vm4, %v2731_v29, %v2682_v44 }
 0x69e   : > { %3203 = vmatmul.msk.f32.gmra.mxu3 %vm354_vm0, %v2748_v31 }
 0x6a2   : > { %v2855_v45 = vpop.f32.mrf.mxu3 }
 0x6a3   : > { %v2856_v41 = vadd.f32 %v5066_v20, %v2855_v45 }
 0x6a5   : > { %2881 = vst.msk [vmem:[%s5074_s18 + $0x58] sm:$0xff] %vm354_vm0, %v2856_v41 }
 0x6db   : > { %v2858_v52 = vpop.f32.mrf.mxu3 }
 0x6dc   : > { %v2859_v37 = vadd.f32 %v5066_v20, %v2858_v52 }
 0x6de   : > { %2882 = vst.msk [vmem:[%s5074_s18 + $0x60] sm:$0xff] %vm354_vm0, %v2859_v37 }
 0x6eb   : > { %v2861_v62 = vpop.f32.mrf.mxu3 }
 0x6ec   : > { %v2862_v42 = vadd.f32 %v5066_v20, %v2861_v62 }
 0x6ee   : > { %2883 = vst.msk [vmem:[%s5074_s18 + $0x68] sm:$0xff] %vm354_vm0, %v2862_v42 }
 0x6f3   : > { %v2864_v63 = vpop.f32.mrf.mxu3 }
 0x6f4   : > { %v2865_v10 = vadd.f32 %v5066_v20, %v2864_v63 }
 0x6f6   : > { %2884 = vst.msk [vmem:[%s5074_s18 + $0x70] sm:$0xff] %vm354_vm0, %v2865_v10 }
 0x721   : > { %v2867_v26 = vpop.f32.mrf.mxu3 }
 0x722   : > { %v2868_v38 = vadd.f32 %v5066_v20, %v2867_v26 }
 0x724   : > { %2885 = vst.msk [vmem:[%s5074_s18 + $0x78] sm:$0xff] %vm354_vm0, %v2868_v38 }
 0x725 PF: > { %s17_s26 = sadd.s32 1, %s3600_s26   ;;  %s5362_s24 = smov %s3596_s25 }
 0x726   : > { %p14_p5 = scmp.ge.s32.totalorder %s17_s26, 4   ;;  %s5363_s25 = smov %s5365_s27 }
 0x728   :  { %16 = sbr.rel (!%p14_p5) target bundleno = 2 (0x2), region = 87 }

</bundles_post_ra>
